<compile_context>
chip_gen: v7x
topology: tpu7x:2x2x1
jax: 0.10.0
libtpu: 0.0.40
codegen_flags: <defaults>
</compile_context>

<pallas_src>
import functools

import jax
import jax.numpy as jnp
from jax.experimental import pallas as pl
from jax.experimental.pallas import tpu as pltpu


def _round_up(x: int, m: int) -> int:
    return ((x + m - 1) // m) * m


def mlp_kernel(x_ref, w1_ref, b1_ref, w2_ref, b2_ref, o_ref, *, hc: int):
    # x_ref:  (TB, 784) f32      w1_ref: (784, H) bf16   b1_ref: (1, H)  f32
    # w2_ref: (H, Cp)   bf16     b2_ref: (1, Cp)  f32    o_ref:  (TB, Cp) bf16
    xb = x_ref[...].astype(jnp.bfloat16)      # f32->bf16 on VPU, hidden under MXU
    tb = xb.shape[0]
    H = w1_ref.shape[1]
    Cp = o_ref.shape[1]

    acc = jnp.zeros((tb, Cp), jnp.float32)
    # Short static loop over hidden-dim chunks (fully unrolled): avoids
    # materializing the full (tb, H) f32 hidden activation + a bf16 copy.
    for h0 in range(0, H, hc):
        h = jnp.dot(xb, w1_ref[:, h0:h0 + hc],
                    preferred_element_type=jnp.float32)
        h = jnp.maximum(h + b1_ref[:, h0:h0 + hc], 0.0)   # bias + ReLU in f32 (VPU)
        # dropout (eval/inference mode) == identity
        acc = acc + jnp.dot(h.astype(jnp.bfloat16), w2_ref[h0:h0 + hc, :],
                            preferred_element_type=jnp.float32)

    o_ref[...] = (acc + b2_ref[...]).astype(o_ref.dtype)


def mlp_forward(x_nchw, w1, b1, w2, b2, *, tb: int | None = None):
    """x_nchw: (B, 1, 28, 28) float32. Returns (B, n_classes) float32."""
    B = x_nchw.shape[0]
    K, H = w1.shape          # 784, 1024
    C = w2.shape[1]          # n_classes
    Cp = _round_up(C, 128)   # 128 -> lane-dense second matmul + unmasked stores

    # nn.Flatten: free metadata reshape. x stays f32 and unpadded along K;
    # the bf16 cast happens inside the kernel (no extra HBM passes over x).
    x = x_nchw.reshape(B, K)

    # Weights cast once to bf16 (halves the dominant weight traffic); output
    # width zero-padded to 128 lanes. Biases stay f32.
    w1_p = w1.astype(jnp.bfloat16)
    w2_p = jnp.pad(w2.astype(jnp.bfloat16), ((0, 0), (0, Cp - C)))
    b1_p = b1.reshape(1, H).astype(jnp.float32)
    b2_p = jnp.pad(b2.astype(jnp.float32), ((0, Cp - C),)).reshape(1, Cp)

    # Batch tile: small batches -> a single minimal tile; larger batches ->
    # 256/512-row tiles so the grid has several steps (software pipelining of
    # the x DMA / out writeback, and both v7x TensorCores get work).
    if tb is None:
        if B <= 256:
            tb = _round_up(B, 8)
        elif B <= 2048:
            tb = 256
        else:
            tb = 512
    Bp = _round_up(B, tb)
    x_p = jnp.pad(x, ((0, Bp - B), (0, 0))) if Bp != B else x

    grid = (Bp // tb,)
    hc = min(512, H)

    cost = pl.CostEstimate(
        flops=2 * Bp * (K * H + H * Cp),
        transcendentals=0,
        bytes_accessed=(Bp * K * 4           # x read (f32)
                        + K * H * 2          # w1 (bf16)
                        + H * Cp * 2         # w2 (bf16)
                        + H * 4 + Cp * 4     # biases
                        + Bp * Cp * 2),      # out write (bf16)
    )

    out = pl.pallas_call(
        functools.partial(mlp_kernel, hc=hc),
        out_shape=jax.ShapeDtypeStruct((Bp, Cp), jnp.bfloat16),
        grid=grid,
        in_specs=[
            pl.BlockSpec((tb, K), lambda i: (i, 0)),    # x tile: pipelined
            pl.BlockSpec((K, H), lambda i: (0, 0)),     # w1: VMEM-resident
            pl.BlockSpec((1, H), lambda i: (0, 0)),     # b1: VMEM-resident
            pl.BlockSpec((H, Cp), lambda i: (0, 0)),    # w2: VMEM-resident
            pl.BlockSpec((1, Cp), lambda i: (0, 0)),    # b2: VMEM-resident
        ],
        out_specs=pl.BlockSpec((tb, Cp), lambda i: (i, 0)),
        compiler_params=pltpu.CompilerParams(
            dimension_semantics=("parallel",),          # v7x: 2 TCs split tiles
            vmem_limit_bytes=32 * 1024 * 1024,          # ~9 MiB used at tb=512
        ),
        cost_estimate=cost,
    )(x_p, w1_p, b1_p, w2_p, b2_p)

    # Padded batch rows / padded output lanes sliced away; tiny cast to f32.
    return out[:B, :C].astype(jnp.float32)


def init_params(key, n_classes):
    """Deterministic init mirroring nn.Linear default U(-1/sqrt(fan_in), 1/sqrt(fan_in))."""
    k1, k2, k3, k4 = jax.random.split(key, 4)
    bound1 = 1.0 / jnp.sqrt(784.0)
    bound2 = 1.0 / jnp.sqrt(1024.0)
    # stored as (in_features, out_features)
    w1 = jax.random.uniform(k1, (784, 1024), jnp.float32, -bound1, bound1)
    b1 = jax.random.uniform(k2, (1024,), jnp.float32, -bound1, bound1)
    w2 = jax.random.uniform(k3, (1024, n_classes), jnp.float32, -bound2, bound2)
    b2 = jax.random.uniform(k4, (n_classes,), jnp.float32, -bound2, bound2)
    return w1, b1, w2, b2


if __name__ == "__main__":
    n_classes = 10
    key = jax.random.PRNGKey(0)
    k_x, k_p = jax.random.split(key)

    # MNIST-like input: batch=2, NCHW (2, 1, 28, 28) -> flatten gives 784 features
    x = jax.random.normal(k_x, (2, 1, 28, 28), dtype=jnp.float32)
    w1, b1, w2, b2 = init_params(k_p, n_classes)

    out = mlp_forward(x, w1, b1, w2, b2)
    jax.block_until_ready(out)
    assert out.shape == (2, n_classes)
    assert out.dtype == jnp.float32

    # Reference 1: plain JAX with the same bf16 operands / f32 accumulation
    # (tight up to the final bf16 rounding of the kernel's output store).
    xf = x.reshape(2, -1)
    h_ref = jnp.maximum(
        jnp.dot(xf.astype(jnp.bfloat16), w1.astype(jnp.bfloat16),
                preferred_element_type=jnp.float32) + b1, 0.0)
    ref_bf16 = jnp.dot(h_ref.astype(jnp.bfloat16), w2.astype(jnp.bfloat16),
                       preferred_element_type=jnp.float32) + b2
    assert jnp.allclose(out, ref_bf16, atol=5e-3, rtol=5e-3)

    # Reference 2: full f32 forward (loose; bounds bf16 quantization error).
    ref_f32 = jnp.maximum(xf @ w1 + b1, 0.0) @ w2 + b2
    assert jnp.allclose(out, ref_f32, atol=5e-2, rtol=5e-2)

    print("KERNEL_OK")
</pallas_src>

<mosaic_0001>
module attributes {stable_mosaic.version = 11 : i64} {
  func.func @mlp_kernel(%arg0: i32, %arg1: memref<8x784xf32, #tpu.memory_space<vmem>>, %arg2: memref<784x1024xbf16, #tpu.memory_space<vmem>>, %arg3: memref<1x1024xf32, #tpu.memory_space<vmem>>, %arg4: memref<1024x128xbf16, #tpu.memory_space<vmem>>, %arg5: memref<1x128xf32, #tpu.memory_space<vmem>>, %arg6: memref<8x128xbf16, #tpu.memory_space<vmem>>) attributes {dimension_semantics = [#tpu.dimension_semantics<parallel>], iteration_bounds = array<i64: 1>, scalar_prefetch = 0 : i64, scratch_operands = 0 : i64, tpu.core_type = #tpu.core_type<tc>, window_params = [{transform_indices = @transform_0, window_bounds = array<i64: 8, 784>}, {pipeline_mode = #tpu.pipeline_mode<synchronous>, transform_indices = @transform_1, window_bounds = array<i64: 784, 1024>}, {pipeline_mode = #tpu.pipeline_mode<synchronous>, transform_indices = @transform_2, window_bounds = array<i64: 1, 1024>}, {pipeline_mode = #tpu.pipeline_mode<synchronous>, transform_indices = @transform_3, window_bounds = array<i64: 1024, 128>}, {pipeline_mode = #tpu.pipeline_mode<synchronous>, transform_indices = @transform_4, window_bounds = array<i64: 1, 128>}, {transform_indices = @transform_5, window_bounds = array<i64: 8, 128>}]} {
    %c0 = arith.constant 0 : index
    %c0_0 = arith.constant 0 : index
    %0 = vector.load %arg1[%c0, %c0_0] : memref<8x784xf32, #tpu.memory_space<vmem>>, vector<8x784xf32>
    %1 = arith.truncf %0 : vector<8x784xf32> to vector<8x784xbf16>
    %cst = arith.constant 0.000000e+00 : f32
    %2 = vector.broadcast %cst : f32 to vector<8x128xf32>
    %c0_1 = arith.constant 0 : index
    %c0_2 = arith.constant 0 : index
    %3 = vector.load %arg2[%c0_1, %c0_2] : memref<784x1024xbf16, #tpu.memory_space<vmem>>, vector<784x512xbf16>
    %cst_3 = arith.constant dense<0.000000e+00> : vector<8x512xf32>
    %4 = tpu.matmul %1, %3, %cst_3 {dimension_numbers = #tpu.dot_dimension_numbers<[1], [0], [0], [1], [0, 0, 1, 1], [], []>} : vector<8x784xbf16>, vector<784x512xbf16>, vector<8x512xf32> -> vector<8x512xf32>
    %c0_4 = arith.constant 0 : index
    %c0_5 = arith.constant 0 : index
    %5 = vector.load %arg3[%c0_4, %c0_5] : memref<1x1024xf32, #tpu.memory_space<vmem>>, vector<1x512xf32>
    %6 = vector.broadcast %5 : vector<1x512xf32> to vector<8x512xf32>
    %7 = arith.addf %4, %6 : vector<8x512xf32>
    %cst_6 = arith.constant 0.000000e+00 : f32
    %8 = vector.broadcast %cst_6 : f32 to vector<8x512xf32>
    %9 = arith.maximumf %7, %8 : vector<8x512xf32>
    %10 = arith.truncf %9 : vector<8x512xf32> to vector<8x512xbf16>
    %c0_7 = arith.constant 0 : index
    %c0_8 = arith.constant 0 : index
    %11 = vector.load %arg4[%c0_7, %c0_8] : memref<1024x128xbf16, #tpu.memory_space<vmem>>, vector<512x128xbf16>
    %cst_9 = arith.constant dense<0.000000e+00> : vector<8x128xf32>
    %12 = tpu.matmul %10, %11, %cst_9 {dimension_numbers = #tpu.dot_dimension_numbers<[1], [0], [0], [1], [0, 0, 1, 1], [], []>} : vector<8x512xbf16>, vector<512x128xbf16>, vector<8x128xf32> -> vector<8x128xf32>
    %13 = arith.addf %2, %12 : vector<8x128xf32>
    %c0_10 = arith.constant 0 : index
    %c512 = arith.constant 512 : index
    %14 = vector.load %arg2[%c0_10, %c512] : memref<784x1024xbf16, #tpu.memory_space<vmem>>, vector<784x512xbf16>
    %cst_11 = arith.constant dense<0.000000e+00> : vector<8x512xf32>
    %15 = tpu.matmul %1, %14, %cst_11 {dimension_numbers = #tpu.dot_dimension_numbers<[1], [0], [0], [1], [0, 0, 1, 1], [], []>} : vector<8x784xbf16>, vector<784x512xbf16>, vector<8x512xf32> -> vector<8x512xf32>
    %c0_12 = arith.constant 0 : index
    %c512_13 = arith.constant 512 : index
    %16 = vector.load %arg3[%c0_12, %c512_13] : memref<1x1024xf32, #tpu.memory_space<vmem>>, vector<1x512xf32>
    %17 = vector.broadcast %16 : vector<1x512xf32> to vector<8x512xf32>
    %18 = arith.addf %15, %17 : vector<8x512xf32>
    %cst_14 = arith.constant 0.000000e+00 : f32
    %19 = vector.broadcast %cst_14 : f32 to vector<8x512xf32>
    %20 = arith.maximumf %18, %19 : vector<8x512xf32>
    %21 = arith.truncf %20 : vector<8x512xf32> to vector<8x512xbf16>
    %c512_15 = arith.constant 512 : index
    %c0_16 = arith.constant 0 : index
    %22 = vector.load %arg4[%c512_15, %c0_16] : memref<1024x128xbf16, #tpu.memory_space<vmem>>, vector<512x128xbf16>
    %cst_17 = arith.constant dense<0.000000e+00> : vector<8x128xf32>
    %23 = tpu.matmul %21, %22, %cst_17 {dimension_numbers = #tpu.dot_dimension_numbers<[1], [0], [0], [1], [0, 0, 1, 1], [], []>} : vector<8x512xbf16>, vector<512x128xbf16>, vector<8x128xf32> -> vector<8x128xf32>
    %24 = arith.addf %13, %23 : vector<8x128xf32>
    %c0_18 = arith.constant 0 : index
    %c0_19 = arith.constant 0 : index
    %25 = vector.load %arg5[%c0_18, %c0_19] : memref<1x128xf32, #tpu.memory_space<vmem>>, vector<1x128xf32>
    %26 = vector.broadcast %25 : vector<1x128xf32> to vector<8x128xf32>
    %27 = arith.addf %24, %26 : vector<8x128xf32>
    %28 = arith.truncf %27 : vector<8x128xf32> to vector<8x128xbf16>
    %c0_20 = arith.constant 0 : index
    %c0_21 = arith.constant 0 : index
    %29 = vector.load %arg6[%c0_20, %c0_21] : memref<8x128xbf16, #tpu.memory_space<vmem>>, vector<8x128xbf16>
    tpu.vector_store %arg6[%c0_20, %c0_21], %28 {strides = array<i32>} : memref<8x128xbf16, #tpu.memory_space<vmem>>, vector<8x128xbf16>,
    return
  }
  func.func @transform_0(%arg0: i32) -> (i32, i32) {
    %c0_i32 = arith.constant 0 : i32
    %c0_i32_0 = arith.constant 0 : i32
    return %arg0, %c0_i32 : i32, i32
  }
  func.func @transform_1(%arg0: i32) -> (i32, i32) {
    %c0_i32 = arith.constant 0 : i32
    %c0_i32_0 = arith.constant 0 : i32
    %c0_i32_1 = arith.constant 0 : i32
    return %c0_i32, %c0_i32_0 : i32, i32
  }
  func.func @transform_2(%arg0: i32) -> (i32, i32) {
    %c0_i32 = arith.constant 0 : i32
    %c0_i32_0 = arith.constant 0 : i32
    %c0_i32_1 = arith.constant 0 : i32
    return %c0_i32, %c0_i32_0 : i32, i32
  }
  func.func @transform_3(%arg0: i32) -> (i32, i32) {
    %c0_i32 = arith.constant 0 : i32
    %c0_i32_0 = arith.constant 0 : i32
    %c0_i32_1 = arith.constant 0 : i32
    return %c0_i32, %c0_i32_0 : i32, i32
  }
  func.func @transform_4(%arg0: i32) -> (i32, i32) {
    %c0_i32 = arith.constant 0 : i32
    %c0_i32_0 = arith.constant 0 : i32
    %c0_i32_1 = arith.constant 0 : i32
    return %c0_i32, %c0_i32_0 : i32, i32
  }
  func.func @transform_5(%arg0: i32) -> (i32, i32) {
    %c0_i32 = arith.constant 0 : i32
    %c0_i32_0 = arith.constant 0 : i32
    return %arg0, %c0_i32 : i32, i32
  }
}

</mosaic_0001>

<bundles_post_ra>
// kernel: tpu_custom_call.1
= control target key start
LH: loop header
LB: loop body
LE: loop exit
PB: predicated region body
PF: predicated region fallthrough
CT: control target
= control target key end

     0   :  { %10 = vsyncpa [#allocation3], 0  ;;  %s4884_s0 = inlined_call_operand.hbm [shape: f32[8,784], index: 0, kind: input, shape index: {}]   ;;  %s4885_s1 = inlined_call_operand.hbm [shape: bf16[784,1024], index: 1, kind: input, shape index: {}]   ;;  %s4886_s2 = inlined_call_operand.hbm [shape: f32[1,1024], index: 2, kind: input, shape index: {}]   ;;  %s4887_s3 = inlined_call_operand.hbm [shape: bf16[1024,128], index: 3, kind: input, shape index: {}]   ;;  %s4888_s4 = inlined_call_operand.hbm [shape: f32[1,128], index: 4, kind: input, shape index: {}]   ;;  %s4889_s5 = inlined_call_operand.hbm [shape: bf16[8,128], index: 5, kind: output, shape index: {}]  }
   0x1   :  { %11 = vsyncpa [#allocation6], 0 }
   0x2   :  { %12 = vsyncpa [#allocation9], 0 }
   0x3   :  { %13 = vsyncpa [#allocation4], 0  ;;  %s4689_s18 = smov [#allocation5]   ;;  %s4549_s22 = scalar_lea.hbm %s4885_s1, 50176 }
   0x4   :  { %s29_s19 = sshll.u32 %s4689_s18, 4  ;;  %p4550_p0 = scmp.ne.s32.totalorder %s4885_s1, %s4549_s22  ;;  %s30_s19 = int_to_ptr.vmem [resolvable:$true] %s29_s19 }
   0x5   :  { %p4553_p1 = scmp.lt.u32.totalorder %s4549_s22, %s4885_s1 }
   0x7   :  { %p4555_p2 = pnand %p4553_p1, %p4550_p0 }
   0x9   :  { %4558 = shalt.err (!%p4555_p2)
}
   0xa   :  { %s4559_s27 = scalar_lea.vmem %s30_s19, 50176  ;;  %p4564_p4 = scmp.lt.s32.totalorder %s30_s19, %s30_s19 }
   0xb   :  { %p4560_p3 = scmp.ne.s32.totalorder %s30_s19, %s4559_s27  ;;  %p4565_p5 = scmp.lt.s32.totalorder %s4559_s27, %s4559_s27 }
   0xd   :  { %p4566_p6 = por %p4565_p5, %p4564_p4 }
   0xf   :  { %p4567_p7 = pnand %p4566_p6, %p4560_p3 }
  0x11   :  { %4570 = shalt.err (!%p4567_p7)
}
  0x12   :  { %s4690_s28 = smov 512   ;;  %s4691_s29 = smov 32  }
  0x13   :  { %35 = dma.hbm_to_vmem [thread:$0]  %s4885_s1, 50176, %s30_s19, [#allocation6], %s4690_s28, %s4690_s28, %s4691_s29  }
  0x14   :  { %s4692_s7 = smov [#allocation8]   ;;  %s4571_s11 = scalar_lea.hbm %s4887_s3, 8192 }
  0x15   :  { %s51_s8 = sshll.u32 %s4692_s7, 4  ;;  %p4572_p8 = scmp.ne.s32.totalorder %s4887_s3, %s4571_s11  ;;  %s52_s8 = int_to_ptr.vmem [resolvable:$true] %s51_s8 }
  0x16   :  { %p4575_p9 = scmp.lt.u32.totalorder %s4571_s11, %s4887_s3 }
  0x18   :  { %p4577_p10 = pnand %p4575_p9, %p4572_p8 }
  0x1a   :  { %4580 = shalt.err (!%p4577_p10)
}
  0x1b   :  { %s4581_s16 = scalar_lea.vmem %s52_s8, 8192  ;;  %p4586_p12 = scmp.lt.s32.totalorder %s52_s8, %s52_s8 }
  0x1c   :  { %p4582_p11 = scmp.ne.s32.totalorder %s52_s8, %s4581_s16  ;;  %p4587_p13 = scmp.lt.s32.totalorder %s4581_s16, %s4581_s16 }
  0x1e   :  { %p4588_p0 = por %p4587_p13, %p4586_p12 }
  0x20   :  { %p4589_p1 = pnand %p4588_p0, %p4582_p11 }
  0x22   :  { %4592 = shalt.err (!%p4589_p1)
}
  0x23   :  { %s4693_s1 = smov 64   ;;  %s4694_s17 = smov 4  }
  0x24   :  { %57 = dma.hbm_to_vmem [thread:$0]  %s4887_s3, 8192, %s52_s8, [#allocation9], %s4693_s1, %s4693_s1, %s4694_s17  }
  0x25   :  { %s4695_s20 = smov [#allocation2]   ;;  %s4696_s22 = smov [#allocation7]  }
  0x26   :  { %s20_s21 = sshll.u32 %s4695_s20, 4  ;;  %s42_s23 = sshll.u32 %s4696_s22, 4  ;;  %s21_s21 = int_to_ptr.vmem [resolvable:$true] %s20_s21  ;;  %s43_s23 = int_to_ptr.vmem [resolvable:$true] %s42_s23 }
  0x27   :  { %s4593_s26 = scalar_lea.hbm %s4884_s0, 896 }
  0x28   :  { %p4594_p2 = scmp.ne.s32.totalorder %s4884_s0, %s4593_s26  ;;  %p4597_p3 = scmp.lt.u32.totalorder %s4593_s26, %s4884_s0 }
  0x2a   :  { %p4599_p4 = pnand %p4597_p3, %p4594_p2 }
  0x2c   :  { %4602 = shalt.err (!%p4599_p4)
}
  0x2d   :  { %s4603_s3 = scalar_lea.vmem %s21_s21, 896  ;;  %p4608_p6 = scmp.lt.s32.totalorder %s21_s21, %s21_s21 }
  0x2e   :  { %p4604_p5 = scmp.ne.s32.totalorder %s21_s21, %s4603_s3  ;;  %p4609_p7 = scmp.lt.s32.totalorder %s4603_s3, %s4603_s3 }
  0x30   :  { %p4610_p8 = por %p4609_p7, %p4608_p6 }
  0x32   :  { %p4611_p9 = pnand %p4610_p8, %p4604_p5 }
  0x34   :  { %4614 = shalt.err (!%p4611_p9)
}
  0x35   :  { %23 = dma.hbm_to_vmem [thread:$0]  %s4884_s0, 896, %s21_s21, [#allocation3]  }
  0x36   :  { %s4615_s10 = scalar_lea.hbm %s4886_s2, 128 }
  0x37   :  { %p4616_p10 = scmp.ne.s32.totalorder %s4886_s2, %s4615_s10  ;;  %p4619_p11 = scmp.lt.u32.totalorder %s4615_s10, %s4886_s2 }
  0x39   :  { %p4621_p12 = pnand %p4619_p11, %p4616_p10 }
  0x3b   :  { %4624 = shalt.err (!%p4621_p12)
}
  0x3c   :  { %s4625_s15 = scalar_lea.vmem %s43_s23, 128  ;;  %p4630_p0 = scmp.lt.s32.totalorder %s43_s23, %s43_s23 }
  0x3d   :  { %p4626_p13 = scmp.ne.s32.totalorder %s43_s23, %s4625_s15  ;;  %p4631_p1 = scmp.lt.s32.totalorder %s4625_s15, %s4625_s15 }
  0x3f   :  { %p4632_p2 = por %p4631_p1, %p4630_p0 }
  0x41   :  { %p4633_p3 = pnand %p4632_p2, %p4626_p13 }
  0x43   :  { %4636 = shalt.err (!%p4633_p3)
}
  0x44   :  { %45 = dma.hbm_to_vmem [thread:$0]  %s4886_s2, 128, %s43_s23, [#allocation6]  }
  0x45   :  { %s4697_s1 = smov [#allocation10]   ;;  %s4637_s20 = scalar_lea.hbm %s4888_s4, 16 }
  0x46   :  { %s64_s17 = sshll.u32 %s4697_s1, 4  ;;  %p4638_p4 = scmp.ne.s32.totalorder %s4888_s4, %s4637_s20  ;;  %s65_s17 = int_to_ptr.vmem [resolvable:$true] %s64_s17 }
  0x47   :  { %p4641_p5 = scmp.lt.u32.totalorder %s4637_s20, %s4888_s4 }
  0x49   :  { %p4643_p6 = pnand %p4641_p5, %p4638_p4 }
  0x4b   :  { %4646 = shalt.err (!%p4643_p6)
}
  0x4c   :  { %s4647_s26 = scalar_lea.vmem %s65_s17, 16  ;;  %s4651_s2 = scalar_lea.vmem %s65_s17, 32 }
  0x4d   :  { %p4648_p7 = scmp.ne.s32.totalorder %s65_s17, %s4647_s26  ;;  %p4652_p8 = scmp.lt.s32.totalorder %s65_s17, %s65_s17 }
  0x4e   :  { %p4653_p9 = scmp.lt.s32.totalorder %s4651_s2, %s4647_s26 }
  0x50   :  { %p4654_p10 = por %p4653_p9, %p4652_p8 }
  0x52   :  { %p4655_p11 = pnand %p4654_p10, %p4648_p7 }
  0x54   :  { %4658 = shalt.err (!%p4655_p11)
}
  0x55   :  { %67 = dma.hbm_to_vmem [thread:$0]  %s4888_s4, 16, %s65_s17, [#allocation9]  }
  0x56   :  { %4681 = dma.done.wait [#allocation3], 896  }
  0x57   :  { %4682 = vsyncadd [#allocation3], 4294966400 }
  0x58   :  { %4683 = dma.done.wait [#allocation6], 50304  }
  0x59   :  { %4684 = vsyncadd [#allocation6], 4294916992 }
  0x5a   :  { %4685 = dma.done.wait [#allocation9], 8208  }
  0x5b   :  { %4686 = vsyncadd [#allocation9], 4294959088  ;;  %v98_v0 = vld [vmem:[#allocation5] sm:$0xff]  ;;  %v99_v2 = vld [vmem:[#allocation5 + $0x8] sm:$0xff]  ;;  %vm1296_vm0 = vcmask 130048   ;;  %s4699_s4 = smov [#allocation11]  }
  0x5c   :  { %v100_v1 = vld [vmem:[#allocation5 + $0x20] sm:$0xff]  ;;  %v101_v4 = vld [vmem:[#allocation5 + $0x28] sm:$0xff]  ;;  %v85_v53 = vld [vmem:[#allocation2 + $0x8] sm:$0xff]  ;;  %s3858_s28 = sshll.u32 %s4699_s4, 4  ;;  %s3859_s28 = int_to_ptr.vmem [resolvable:$true] %s3858_s28 }
  0x5d   :  { %v3870_v3 = vcombine.high %v98_v0, %v100_v1  ;;  %v3869_v5 = vcombine.low %v98_v0, %v100_v1  ;;  %v102_v6 = vld [vmem:[#allocation5 + $0x40] sm:$0xff]  ;;  %v3872_v8 = vcombine.high %v99_v2, %v101_v4  ;;  %v3871_v9 = vcombine.low %v99_v2, %v101_v4  ;;  %v103_v11 = vld [vmem:[#allocation5 + $0x48] sm:$0xff]  ;;  %s4659_s29 = scalar_lea.vmem %s3859_s28, 64  ;;  %p4664_p13 = scmp.lt.s32.totalorder %s3859_s28, %s3859_s28 }
  0x5e   :  { %v104_v7 = vld [vmem:[#allocation5 + $0x60] sm:$0xff]  ;;  %v105_v12 = vld [vmem:[#allocation5 + $0x68] sm:$0xff]  ;;  %v4790_v57 = vpack.c.bf16 %v85_v53, %v85_v53  ;;  %p4660_p12 = scmp.ne.s32.totalorder %s3859_s28, %s4659_s29  ;;  %p4665_p0 = scmp.lt.s32.totalorder %s4659_s29, %s4659_s29 }
  0x5f   :  { %v3874_v10 = vcombine.high %v102_v6, %v104_v7  ;;  %v106_v13 = vld [vmem:[#allocation5 + $0x80] sm:$0xff]  ;;  %1300 = vmatprep.subr.bf16.mxu0 %v3870_v3  ;;  %v3876_v14 = vcombine.high %v103_v11, %v105_v12  ;;  %v107_v16 = vld [vmem:[#allocation5 + $0x88] sm:$0xff]  ;;  %1464 = vmatprep.subr.bf16.mxu1 %v3872_v8  ;;  %v3873_v18 = vcombine.low %v102_v6, %v104_v7 }
  0x60   :  { %v108_v15 = vld [vmem:[#allocation5 + $0xa0] sm:$0xff]  ;;  %v109_v17 = vld [vmem:[#allocation5 + $0xa8] sm:$0xff]  ;;  %1301 = vmatpush1.bf16.msra.mxu0 %v3869_v5  ;;  %1465 = vmatpush1.bf16.msra.mxu1 %v3871_v9  ;;  %v3875_v19 = vcombine.low %v103_v11, %v105_v12  ;;  %p4666_p1 = por %p4665_p0, %p4664_p13 }
  0x61   :  { %1302 = vmatprep.subr.bf16.mxu0 %v3874_v10  ;;  %v3878_v20 = vcombine.high %v106_v13, %v108_v15  ;;  %1466 = vmatprep.subr.bf16.mxu1 %v3876_v14  ;;  %v3880_v21 = vcombine.high %v107_v16, %v109_v17  ;;  %v110_v22 = vld [vmem:[#allocation5 + $0xc0] sm:$0xff]  ;;  %v111_v24 = vld [vmem:[#allocation5 + $0xc8] sm:$0xff]  ;;  %v3877_v26 = vcombine.low %v106_v13, %v108_v15 }
  0x62   :  { %v112_v23 = vld [vmem:[#allocation5 + $0xe0] sm:$0xff]  ;;  %v113_v25 = vld [vmem:[#allocation5 + $0xe8] sm:$0xff]  ;;  %v3879_v27 = vcombine.low %v107_v16, %v109_v17  ;;  %1332 = vmatprep.mubr.bf16.mxu0 %v4790_v57  ;;  %1496 = vmatprep.mubr.bf16.mxu1 %v4790_v57  ;;  %p4667_p2 = pnand %p4666_p1, %p4660_p12 }
  0x63   :  { %v3882_v28 = vcombine.high %v110_v22, %v112_v23  ;;  %v3884_v29 = vcombine.high %v111_v24, %v113_v25  ;;  %v114_v30 = vld [vmem:[#allocation5 + $0x100] sm:$0xff]  ;;  %v115_v32 = vld [vmem:[#allocation5 + $0x108] sm:$0xff]  ;;  %v3881_v34 = vcombine.low %v110_v22, %v112_v23  ;;  %v3883_v35 = vcombine.low %v111_v24, %v113_v25 }
  0x64   :  { %1303 = vmatpush1.bf16.msra.mxu0 %v3873_v18  ;;  %1467 = vmatpush1.bf16.msra.mxu1 %v3875_v19  ;;  %v116_v31 = vld [vmem:[#allocation5 + $0x120] sm:$0xff]  ;;  %v117_v33 = vld [vmem:[#allocation5 + $0x128] sm:$0xff] }
  0x65   :  { %1304 = vmatprep.subr.bf16.mxu0 %v3878_v20  ;;  %1468 = vmatprep.subr.bf16.mxu1 %v3880_v21  ;;  %v3886_v36 = vcombine.high %v114_v30, %v116_v31  ;;  %v3888_v37 = vcombine.high %v115_v32, %v117_v33  ;;  %v118_v38 = vld [vmem:[#allocation5 + $0x140] sm:$0xff]  ;;  %v119_v40 = vld [vmem:[#allocation5 + $0x148] sm:$0xff]  ;;  %v3885_v42 = vcombine.low %v114_v30, %v116_v31 }
  0x66   :  { %v120_v39 = vld [vmem:[#allocation5 + $0x160] sm:$0xff]  ;;  %v121_v41 = vld [vmem:[#allocation5 + $0x168] sm:$0xff]  ;;  %v3887_v43 = vcombine.low %v115_v32, %v117_v33 }
  0x67   :  { %v3890_v44 = vcombine.high %v118_v38, %v120_v39  ;;  %v3892_v45 = vcombine.high %v119_v40, %v121_v41  ;;  %v122_v46 = vld [vmem:[#allocation5 + $0x180] sm:$0xff]  ;;  %v123_v48 = vld [vmem:[#allocation5 + $0x188] sm:$0xff]  ;;  %v3889_v50 = vcombine.low %v118_v38, %v120_v39  ;;  %v3891_v51 = vcombine.low %v119_v40, %v121_v41 }
  0x68   :  { %1305 = vmatpush1.bf16.msra.mxu0 %v3877_v26  ;;  %1469 = vmatpush1.bf16.msra.mxu1 %v3879_v27  ;;  %v124_v47 = vld [vmem:[#allocation5 + $0x1a0] sm:$0xff]  ;;  %v125_v49 = vld [vmem:[#allocation5 + $0x1a8] sm:$0xff] }
  0x69   :  { %1306 = vmatprep.subr.bf16.mxu0 %v3882_v28  ;;  %1470 = vmatprep.subr.bf16.mxu1 %v3884_v29  ;;  %v3894_v52 = vcombine.high %v122_v46, %v124_v47  ;;  %v3896_v54 = vcombine.high %v123_v48, %v125_v49  ;;  %v126_v55 = vld [vmem:[#allocation5 + $0x1c0] sm:$0xff]  ;;  %v127_v58 = vld [vmem:[#allocation5 + $0x1c8] sm:$0xff]  ;;  %v3893_v60 = vcombine.low %v122_v46, %v124_v47 }
  0x6a   :  { %v128_v56 = vld [vmem:[#allocation5 + $0x1e0] sm:$0xff]  ;;  %v129_v59 = vld [vmem:[#allocation5 + $0x1e8] sm:$0xff]  ;;  %v3895_v61 = vcombine.low %v123_v48, %v125_v49 }
  0x6b   :  { %v3898_v62 = vcombine.high %v126_v55, %v128_v56  ;;  %v3900_v63 = vcombine.high %v127_v58, %v129_v59  ;;  %v130_v0 = vld [vmem:[#allocation5 + $0x200] sm:$0xff]  ;;  %v131_v2 = vld [vmem:[#allocation5 + $0x208] sm:$0xff]  ;;  %v3897_v4 = vcombine.low %v126_v55, %v128_v56  ;;  %v3899_v5 = vcombine.low %v127_v58, %v129_v59 }
  0x6c   :  { %1307 = vmatpush1.bf16.msra.mxu0 %v3881_v34  ;;  %1471 = vmatpush1.bf16.msra.mxu1 %v3883_v35  ;;  %v132_v1 = vld [vmem:[#allocation5 + $0x220] sm:$0xff]  ;;  %v133_v3 = vld [vmem:[#allocation5 + $0x228] sm:$0xff] }
  0x6d   :  { %1308 = vmatprep.subr.bf16.mxu0 %v3886_v36  ;;  %1472 = vmatprep.subr.bf16.mxu1 %v3888_v37  ;;  %v3902_v6 = vcombine.high %v130_v0, %v132_v1  ;;  %v3904_v7 = vcombine.high %v131_v2, %v133_v3  ;;  %v134_v8 = vld [vmem:[#allocation5 + $0x240] sm:$0xff]  ;;  %v135_v10 = vld [vmem:[#allocation5 + $0x248] sm:$0xff]  ;;  %v3901_v12 = vcombine.low %v130_v0, %v132_v1 }
  0x6e   :  { %v136_v9 = vld [vmem:[#allocation5 + $0x260] sm:$0xff]  ;;  %v137_v11 = vld [vmem:[#allocation5 + $0x268] sm:$0xff]  ;;  %v3903_v13 = vcombine.low %v131_v2, %v133_v3 }
  0x6f   :  { %v3906_v14 = vcombine.high %v134_v8, %v136_v9  ;;  %v3908_v15 = vcombine.high %v135_v10, %v137_v11  ;;  %v138_v16 = vld [vmem:[#allocation5 + $0x280] sm:$0xff]  ;;  %v139_v18 = vld [vmem:[#allocation5 + $0x288] sm:$0xff]  ;;  %v3905_v20 = vcombine.low %v134_v8, %v136_v9  ;;  %v3907_v21 = vcombine.low %v135_v10, %v137_v11 }
  0x70   :  { %1309 = vmatpush1.bf16.msra.mxu0 %v3885_v42  ;;  %1473 = vmatpush1.bf16.msra.mxu1 %v3887_v43  ;;  %v140_v17 = vld [vmem:[#allocation5 + $0x2a0] sm:$0xff]  ;;  %v141_v19 = vld [vmem:[#allocation5 + $0x2a8] sm:$0xff] }
  0x71   :  { %1310 = vmatprep.subr.bf16.mxu0 %v3890_v44  ;;  %1474 = vmatprep.subr.bf16.mxu1 %v3892_v45  ;;  %v3910_v22 = vcombine.high %v138_v16, %v140_v17  ;;  %v3912_v23 = vcombine.high %v139_v18, %v141_v19  ;;  %v142_v24 = vld [vmem:[#allocation5 + $0x2c0] sm:$0xff]  ;;  %v143_v26 = vld [vmem:[#allocation5 + $0x2c8] sm:$0xff]  ;;  %v3909_v28 = vcombine.low %v138_v16, %v140_v17 }
  0x72   :  { %v144_v25 = vld [vmem:[#allocation5 + $0x2e0] sm:$0xff]  ;;  %v145_v27 = vld [vmem:[#allocation5 + $0x2e8] sm:$0xff]  ;;  %v3911_v29 = vcombine.low %v139_v18, %v141_v19 }
  0x73   :  { %v3914_v30 = vcombine.high %v142_v24, %v144_v25  ;;  %v3916_v31 = vcombine.high %v143_v26, %v145_v27  ;;  %v146_v32 = vld [vmem:[#allocation5 + $0x300] sm:$0xff]  ;;  %v147_v34 = vld [vmem:[#allocation5 + $0x308] sm:$0xff]  ;;  %v3913_v36 = vcombine.low %v142_v24, %v144_v25  ;;  %v3915_v37 = vcombine.low %v143_v26, %v145_v27 }
  0x74   :  { %1311 = vmatpush1.bf16.msra.mxu0 %v3889_v50  ;;  %1475 = vmatpush1.bf16.msra.mxu1 %v3891_v51  ;;  %v148_v33 = vld [vmem:[#allocation5 + $0x320] sm:$0xff]  ;;  %v149_v35 = vld [vmem:[#allocation5 + $0x328] sm:$0xff] }
  0x75   :  { %1312 = vmatprep.subr.bf16.mxu0 %v3894_v52  ;;  %1476 = vmatprep.subr.bf16.mxu1 %v3896_v54  ;;  %v3918_v38 = vcombine.high %v146_v32, %v148_v33  ;;  %v3920_v39 = vcombine.high %v147_v34, %v149_v35  ;;  %v150_v40 = vld [vmem:[#allocation5 + $0x340] sm:$0xff]  ;;  %v151_v42 = vld [vmem:[#allocation5 + $0x348] sm:$0xff]  ;;  %v3917_v44 = vcombine.low %v146_v32, %v148_v33 }
  0x76   :  { %v152_v41 = vld [vmem:[#allocation5 + $0x360] sm:$0xff]  ;;  %v153_v43 = vld [vmem:[#allocation5 + $0x368] sm:$0xff]  ;;  %v3919_v45 = vcombine.low %v147_v34, %v149_v35 }
  0x77   :  { %v3922_v46 = vcombine.high %v150_v40, %v152_v41  ;;  %v3924_v47 = vcombine.high %v151_v42, %v153_v43  ;;  %v154_v48 = vld [vmem:[#allocation5 + $0x380] sm:$0xff]  ;;  %v155_v50 = vld [vmem:[#allocation5 + $0x388] sm:$0xff]  ;;  %v3921_v52 = vcombine.low %v150_v40, %v152_v41  ;;  %v3923_v53 = vcombine.low %v151_v42, %v153_v43 }
  0x78   :  { %1313 = vmatpush1.bf16.msra.mxu0 %v3893_v60  ;;  %1477 = vmatpush1.bf16.msra.mxu1 %v3895_v61  ;;  %v156_v49 = vld [vmem:[#allocation5 + $0x3a0] sm:$0xff]  ;;  %v157_v51 = vld [vmem:[#allocation5 + $0x3a8] sm:$0xff] }
  0x79   :  { %1314 = vmatprep.subr.bf16.mxu0 %v3898_v62  ;;  %1478 = vmatprep.subr.bf16.mxu1 %v3900_v63  ;;  %v3926_v54 = vcombine.high %v154_v48, %v156_v49  ;;  %v3928_v55 = vcombine.high %v155_v50, %v157_v51  ;;  %v158_v56 = vld [vmem:[#allocation5 + $0x3c0] sm:$0xff]  ;;  %v159_v59 = vld [vmem:[#allocation5 + $0x3c8] sm:$0xff]  ;;  %v3925_v61 = vcombine.low %v154_v48, %v156_v49 }
  0x7a   :  { %v160_v58 = vld [vmem:[#allocation5 + $0x3e0] sm:$0xff]  ;;  %v161_v60 = vld [vmem:[#allocation5 + $0x3e8] sm:$0xff]  ;;  %v3927_v62 = vcombine.low %v155_v50, %v157_v51 }
  0x7b   :  { %v3930_v63 = vcombine.high %v158_v56, %v160_v58  ;;  %v3932_v0 = vcombine.high %v159_v59, %v161_v60  ;;  %v162_v1 = vld [vmem:[#allocation5 + $0x400] sm:$0xff]  ;;  %v163_v3 = vld [vmem:[#allocation5 + $0x408] sm:$0xff] }
  0x7c   :  { %1315 = vmatpush1.bf16.msra.mxu0 %v3897_v4  ;;  %1479 = vmatpush1.bf16.msra.mxu1 %v3899_v5  ;;  %v164_v2 = vld [vmem:[#allocation5 + $0x420] sm:$0xff]  ;;  %v165_v4 = vld [vmem:[#allocation5 + $0x428] sm:$0xff]  ;;  %v3929_v5 = vcombine.low %v158_v56, %v160_v58 }
  0x7d   :  { %1316 = vmatprep.subr.bf16.mxu0 %v3902_v6  ;;  %1480 = vmatprep.subr.bf16.mxu1 %v3904_v7  ;;  %v84_v6 = vld [vmem:[#allocation2] sm:$0xff]  ;;  %v3931_v7 = vcombine.low %v159_v59, %v161_v60  ;;  %v3934_v8 = vcombine.high %v162_v1, %v164_v2  ;;  %v3936_v9 = vcombine.high %v163_v3, %v165_v4  ;;  %v166_v10 = vld [vmem:[#allocation5 + $0x440] sm:$0xff] }
  0x7e   :  { %v168_v11 = vld [vmem:[#allocation5 + $0x460] sm:$0xff]  ;;  %v3933_v16 = vcombine.low %v162_v1, %v164_v2  ;;  %v3935_v17 = vcombine.low %v163_v3, %v165_v4  ;;  %v173_v24 = vld [vmem:[#allocation5 + $0x4a8] sm:$0xff] }
  0x7f   :  { %v3938_v18 = vcombine.high %v166_v10, %v168_v11  ;;  %v170_v19 = vld [vmem:[#allocation5 + $0x480] sm:$0xff]  ;;  %v3937_v25 = vcombine.low %v166_v10, %v168_v11  ;;  %v177_v32 = vld [vmem:[#allocation5 + $0x4e8] sm:$0xff] }
  0x80   :  { %1317 = vmatpush1.bf16.msra.mxu0 %v3901_v12  ;;  %1481 = vmatpush1.bf16.msra.mxu1 %v3903_v13  ;;  %v4794_v12 = vpack.c.bf16 %v84_v6, %v84_v6  ;;  %v167_v13 = vld [vmem:[#allocation5 + $0x448] sm:$0xff]  ;;  %v178_v34 = vld [vmem:[#allocation5 + $0x500] sm:$0xff] }
  0x81   :  { %1318 = vmatprep.subr.bf16.mxu0 %v3906_v14  ;;  %1482 = vmatprep.subr.bf16.mxu1 %v3908_v15  ;;  %v169_v14 = vld [vmem:[#allocation5 + $0x468] sm:$0xff]  ;;  %v87_v15 = vld [vmem:[#allocation2 + $0x18] sm:$0xff] }
  0x82   :  { %v3939_v26 = vcombine.low %v167_v13, %v169_v14  ;;  %v180_v35 = vld [vmem:[#allocation5 + $0x520] sm:$0xff]  ;;  %v189_v56 = vld [vmem:[#allocation5 + $0x5a8] sm:$0xff] }
  0x83   :  { %v182_v42 = vld [vmem:[#allocation5 + $0x540] sm:$0xff]  ;;  %v3949_v49 = vcombine.low %v178_v34, %v180_v35  ;;  %v193_v1 = vld [vmem:[#allocation5 + $0x5e8] sm:$0xff] }
  0x84   :  { %1319 = vmatpush1.bf16.msra.mxu0 %v3905_v20  ;;  %1483 = vmatpush1.bf16.msra.mxu1 %v3907_v21  ;;  %v172_v20 = vld [vmem:[#allocation5 + $0x4a0] sm:$0xff]  ;;  %v3940_v21 = vcombine.high %v167_v13, %v169_v14 }
  0x85   :  { %1320 = vmatprep.subr.bf16.mxu0 %v3910_v22  ;;  %1484 = vmatprep.subr.bf16.mxu1 %v3912_v23  ;;  %v4796_v22 = vpack.c.bf16 %v87_v15, %v87_v15  ;;  %v171_v23 = vld [vmem:[#allocation5 + $0x488] sm:$0xff]  ;;  %v3942_v27 = vcombine.high %v170_v19, %v172_v20  ;;  %v3941_v33 = vcombine.low %v170_v19, %v172_v20  ;;  %v184_v43 = vld [vmem:[#allocation5 + $0x560] sm:$0xff] }
  0x86   :  { %v3954_v51 = vcombine.high %v182_v42, %v184_v43  ;;  %v3953_v58 = vcombine.low %v182_v42, %v184_v43  ;;  %v196_v6 = vld [vmem:[#allocation5 + $0x620] sm:$0xff]  ;;  %v213_v43 = vld [vmem:[#allocation5 + $0x728] sm:$0xff] }
  0x87   :  { %v198_v14 = vld [vmem:[#allocation5 + $0x640] sm:$0xff] }
  0x88   :  { %1321 = vmatpush1.bf16.msra.mxu0 %v3909_v28  ;;  %1485 = vmatpush1.bf16.msra.mxu1 %v3911_v29  ;;  %v3944_v28 = vcombine.high %v171_v23, %v173_v24  ;;  %v174_v29 = vld [vmem:[#allocation5 + $0x4c0] sm:$0xff] }
  0x89   :  { %1322 = vmatprep.subr.bf16.mxu0 %v3914_v30  ;;  %1486 = vmatprep.subr.bf16.mxu1 %v3916_v31  ;;  %v176_v30 = vld [vmem:[#allocation5 + $0x4e0] sm:$0xff]  ;;  %v175_v31 = vld [vmem:[#allocation5 + $0x4c8] sm:$0xff] }
  0x8a   :  { %v3948_v40 = vcombine.high %v175_v31, %v177_v32  ;;  %v3945_v41 = vcombine.low %v174_v29, %v176_v30  ;;  %v200_v15 = vld [vmem:[#allocation5 + $0x660] sm:$0xff] }
  0x8c   :  { %1323 = vmatpush1.bf16.msra.mxu0 %v3913_v36  ;;  %1487 = vmatpush1.bf16.msra.mxu1 %v3915_v37  ;;  %v3943_v36 = vcombine.low %v171_v23, %v173_v24  ;;  %v3946_v37 = vcombine.high %v174_v29, %v176_v30  ;;  %v202_v23 = vld [vmem:[#allocation5 + $0x680] sm:$0xff] }
  0x8d   :  { %1324 = vmatprep.subr.bf16.mxu0 %v3918_v38  ;;  %1488 = vmatprep.subr.bf16.mxu1 %v3920_v39  ;;  %v179_v38 = vld [vmem:[#allocation5 + $0x508] sm:$0xff]  ;;  %v204_v24 = vld [vmem:[#allocation5 + $0x6a0] sm:$0xff] }
  0x8e   :  { %v181_v39 = vld [vmem:[#allocation5 + $0x528] sm:$0xff]  ;;  %v3974_v30 = vcombine.high %v202_v23, %v204_v24 }
  0x8f   :  { %v3952_v48 = vcombine.high %v179_v38, %v181_v39  ;;  %v3951_v50 = vcombine.low %v179_v38, %v181_v39  ;;  %v210_v39 = vld [vmem:[#allocation5 + $0x700] sm:$0xff] }
  0x90   :  { %1325 = vmatpush1.bf16.msra.mxu0 %v3917_v44  ;;  %1489 = vmatpush1.bf16.msra.mxu1 %v3919_v45  ;;  %v3947_v44 = vcombine.low %v175_v31, %v177_v32  ;;  %v3950_v45 = vcombine.high %v178_v34, %v180_v35  ;;  %v206_v31 = vld [vmem:[#allocation5 + $0x6c0] sm:$0xff]  ;;  %v209_v35 = vld [vmem:[#allocation5 + $0x6e8] sm:$0xff] }
  0x91   :  { %1326 = vmatprep.subr.bf16.mxu0 %v3922_v46  ;;  %1490 = vmatprep.subr.bf16.mxu1 %v3924_v47  ;;  %v183_v46 = vld [vmem:[#allocation5 + $0x548] sm:$0xff]  ;;  %v208_v32 = vld [vmem:[#allocation5 + $0x6e0] sm:$0xff] }
  0x92   :  { %v185_v47 = vld [vmem:[#allocation5 + $0x568] sm:$0xff]  ;;  %v3978_v38 = vcombine.high %v206_v31, %v208_v32 }
  0x93   :  { %v3955_v59 = vcombine.low %v183_v46, %v185_v47 }
  0x94   :  { %1327 = vmatpush1.bf16.msra.mxu0 %v3921_v52  ;;  %1491 = vmatpush1.bf16.msra.mxu1 %v3923_v53  ;;  %v186_v52 = vld [vmem:[#allocation5 + $0x580] sm:$0xff] }
  0x95   :  { %1328 = vmatprep.subr.bf16.mxu0 %v3926_v54  ;;  %1492 = vmatprep.subr.bf16.mxu1 %v3928_v55  ;;  %v188_v53 = vld [vmem:[#allocation5 + $0x5a0] sm:$0xff]  ;;  %v187_v54 = vld [vmem:[#allocation5 + $0x588] sm:$0xff]  ;;  %v3956_v55 = vcombine.high %v183_v46, %v185_v47 }
  0x96   :  { %v3958_v60 = vcombine.high %v186_v52, %v188_v53  ;;  %v3957_v2 = vcombine.low %v186_v52, %v188_v53  ;;  %v3959_v3 = vcombine.low %v187_v54, %v189_v56  ;;  %v214_v47 = vld [vmem:[#allocation5 + $0x740] sm:$0xff] }
  0x98   :  { %1329 = vmatpush1.bf16.msra.mxu0 %v3925_v61  ;;  %1493 = vmatpush1.bf16.msra.mxu1 %v3927_v62  ;;  %v190_v61 = vld [vmem:[#allocation5 + $0x5c0] sm:$0xff] }
  0x99   :  { %1330 = vmatprep.subr.bf16.mxu0 %v3930_v63  ;;  %1494 = vmatprep.subr.bf16.mxu1 %v3932_v0  ;;  %v192_v62 = vld [vmem:[#allocation5 + $0x5e0] sm:$0xff]  ;;  %v191_v63 = vld [vmem:[#allocation5 + $0x5c8] sm:$0xff]  ;;  %v3960_v0 = vcombine.high %v187_v54, %v189_v56 }
  0x9a   :  { %v3962_v4 = vcombine.high %v190_v61, %v192_v62  ;;  %v3961_v10 = vcombine.low %v190_v61, %v192_v62  ;;  %v3963_v11 = vcombine.low %v191_v63, %v193_v1  ;;  %v220_v56 = vld [vmem:[#allocation5 + $0x7a0] sm:$0xff] }
  0x9c   :  { %1331 = vmatpush1.bf16.msra.mxu0 %v3929_v5  ;;  %1495 = vmatpush1.bf16.msra.mxu1 %v3931_v7  ;;  %v194_v5 = vld [vmem:[#allocation5 + $0x600] sm:$0xff]  ;;  %v195_v7 = vld [vmem:[#allocation5 + $0x608] sm:$0xff] }
  0x9d   :  { %1341 = vmatprep.subr.bf16.mxu0 %v3934_v8  ;;  %1505 = vmatprep.subr.bf16.mxu1 %v3936_v9  ;;  %v3964_v8 = vcombine.high %v191_v63, %v193_v1  ;;  %v197_v9 = vld [vmem:[#allocation5 + $0x628] sm:$0xff]  ;;  %v3966_v13 = vcombine.high %v194_v5, %v196_v6  ;;  %v3965_v19 = vcombine.low %v194_v5, %v196_v6  ;;  %v224_v1 = vld [vmem:[#allocation5 + $0x7e0] sm:$0xff] }
  0x9e   :  { %v3967_v20 = vcombine.low %v195_v7, %v197_v9  ;;  %v226_v6 = vld [vmem:[#allocation5 + $0x800] sm:$0xff] }
  0x9f   :  { %1333 = vmatmul.mubr.bf16.vlgmr.msra.gmra.mrb[0].mxu0 %v4794_v12  ;;  %1497 = vmatmul.mubr.bf16.vlgmr.msra.gmra.mrb[0].mxu1 %v4794_v12 }
  0xa0   :  { %1342 = vmatpush1.bf16.msra.mxu0 %v3933_v16  ;;  %1506 = vmatpush1.bf16.msra.mxu1 %v3935_v17  ;;  %v199_v16 = vld [vmem:[#allocation5 + $0x648] sm:$0xff]  ;;  %v3968_v17 = vcombine.high %v195_v7, %v197_v9  ;;  %v228_v9 = vld [vmem:[#allocation5 + $0x820] sm:$0xff] }
  0xa1   :  { %1343 = vmatprep.subr.bf16.mxu0 %v3938_v18  ;;  %1507 = vmatprep.subr.bf16.mxu1 %v3940_v21  ;;  %v201_v18 = vld [vmem:[#allocation5 + $0x668] sm:$0xff]  ;;  %v3970_v21 = vcombine.high %v198_v14, %v200_v15 }
  0xa2   :  { %1373 = vmatprep.mubr.bf16.mxu0 %v4796_v22  ;;  %1537 = vmatprep.mubr.bf16.mxu1 %v4796_v22  ;;  %v3971_v29 = vcombine.low %v199_v16, %v201_v18 }
  0xa4   :  { %1344 = vmatpush1.bf16.msra.mxu0 %v3937_v25  ;;  %1508 = vmatpush1.bf16.msra.mxu1 %v3939_v26  ;;  %v203_v25 = vld [vmem:[#allocation5 + $0x688] sm:$0xff]  ;;  %v3972_v26 = vcombine.high %v199_v16, %v201_v18  ;;  %v230_v16 = vld [vmem:[#allocation5 + $0x840] sm:$0xff]  ;;  %v3998_v18 = vcombine.high %v226_v6, %v228_v9 }
  0xa5   :  { %1345 = vmatprep.subr.bf16.mxu0 %v3942_v27  ;;  %1509 = vmatprep.subr.bf16.mxu1 %v3944_v28  ;;  %v205_v27 = vld [vmem:[#allocation5 + $0x6a8] sm:$0xff]  ;;  %v3969_v28 = vcombine.low %v198_v14, %v200_v15  ;;  %v86_v14 = vld [vmem:[#allocation2 + $0x10] sm:$0xff] }
  0xa6   :  { %v3976_v34 = vcombine.high %v203_v25, %v205_v27 }
  0xa8   :  { %1346 = vmatpush1.bf16.msra.mxu0 %v3941_v33  ;;  %1510 = vmatpush1.bf16.msra.mxu1 %v3943_v36  ;;  %v207_v33 = vld [vmem:[#allocation5 + $0x6c8] sm:$0xff]  ;;  %v3973_v36 = vcombine.low %v202_v23, %v204_v24  ;;  %v89_v24 = vld [vmem:[#allocation2 + $0x28] sm:$0xff] }
  0xa9   :  { %1347 = vmatprep.subr.bf16.mxu0 %v3946_v37  ;;  %1511 = vmatprep.subr.bf16.mxu1 %v3948_v40  ;;  %v3975_v37 = vcombine.low %v203_v25, %v205_v27  ;;  %v212_v40 = vld [vmem:[#allocation5 + $0x720] sm:$0xff]  ;;  %v3980_v42 = vcombine.high %v207_v33, %v209_v35  ;;  %v4802_v25 = vpack.c.bf16 %v86_v14, %v86_v14 }
  0xaa   :  { %v3982_v46 = vcombine.high %v210_v39, %v212_v40  ;;  %v3981_v52 = vcombine.low %v210_v39, %v212_v40  ;;  %v238_v39 = vld [vmem:[#allocation5 + $0x8c0] sm:$0xff] }
  0xab   :  { %v240_v40 = vld [vmem:[#allocation5 + $0x8e0] sm:$0xff] }
  0xac   :  { %1348 = vmatpush1.bf16.msra.mxu0 %v3945_v41  ;;  %1512 = vmatpush1.bf16.msra.mxu1 %v3947_v44  ;;  %v211_v41 = vld [vmem:[#allocation5 + $0x708] sm:$0xff]  ;;  %v3977_v44 = vcombine.low %v206_v31, %v208_v32  ;;  %v236_v31 = vld [vmem:[#allocation5 + $0x8a0] sm:$0xff]  ;;  %v4804_v32 = vpack.c.bf16 %v89_v24, %v89_v24 }
  0xad   :  { %1349 = vmatprep.subr.bf16.mxu0 %v3950_v45  ;;  %1513 = vmatprep.subr.bf16.mxu1 %v3952_v48  ;;  %v3979_v45 = vcombine.low %v207_v33, %v209_v35  ;;  %v216_v48 = vld [vmem:[#allocation5 + $0x760] sm:$0xff]  ;;  %v3983_v53 = vcombine.low %v211_v41, %v213_v43  ;;  %v235_v33 = vld [vmem:[#allocation5 + $0x888] sm:$0xff] }
  0xae   :  { %v3986_v54 = vcombine.high %v214_v47, %v216_v48  ;;  %v3985_v61 = vcombine.low %v214_v47, %v216_v48  ;;  %v242_v47 = vld [vmem:[#allocation5 + $0x900] sm:$0xff] }
  0xaf   :  { %v244_v48 = vld [vmem:[#allocation5 + $0x920] sm:$0xff] }
  0xb0   :  { %1350 = vmatpush1.bf16.msra.mxu0 %v3949_v49  ;;  %1514 = vmatpush1.bf16.msra.mxu1 %v3951_v50  ;;  %v215_v49 = vld [vmem:[#allocation5 + $0x748] sm:$0xff]  ;;  %v3984_v50 = vcombine.high %v211_v41, %v213_v43 }
  0xb1   :  { %1351 = vmatprep.subr.bf16.mxu0 %v3954_v51  ;;  %1515 = vmatprep.subr.bf16.mxu1 %v3956_v55  ;;  %v217_v51 = vld [vmem:[#allocation5 + $0x768] sm:$0xff]  ;;  %v218_v55 = vld [vmem:[#allocation5 + $0x780] sm:$0xff] }
  0xb2   :  { %v3987_v62 = vcombine.low %v215_v49, %v217_v51  ;;  %v3990_v63 = vcombine.high %v218_v55, %v220_v56  ;;  %v3989_v5 = vcombine.low %v218_v55, %v220_v56  ;;  %v239_v41 = vld [vmem:[#allocation5 + $0x8c8] sm:$0xff]  ;;  %v246_v55 = vld [vmem:[#allocation5 + $0x940] sm:$0xff] }
  0xb3   :  { %v248_v56 = vld [vmem:[#allocation5 + $0x960] sm:$0xff] }
  0xb4   :  { %1352 = vmatpush1.bf16.msra.mxu0 %v3953_v58  ;;  %1516 = vmatpush1.bf16.msra.mxu1 %v3955_v59  ;;  %v219_v58 = vld [vmem:[#allocation5 + $0x788] sm:$0xff]  ;;  %v3988_v59 = vcombine.high %v215_v49, %v217_v51  ;;  %v4009_v51 = vcombine.low %v238_v39, %v240_v40 }
  0xb5   :  { %1353 = vmatprep.subr.bf16.mxu0 %v3958_v60  ;;  %1517 = vmatprep.subr.bf16.mxu1 %v3960_v0  ;;  %v221_v60 = vld [vmem:[#allocation5 + $0x7a8] sm:$0xff]  ;;  %v222_v0 = vld [vmem:[#allocation5 + $0x7c0] sm:$0xff] }
  0xb6   :  { %v3991_v7 = vcombine.low %v219_v58, %v221_v60  ;;  %v3993_v15 = vcombine.low %v222_v0, %v224_v1  ;;  %v243_v49 = vld [vmem:[#allocation5 + $0x908] sm:$0xff] }
  0xb8   :  { %1354 = vmatpush1.bf16.msra.mxu0 %v3957_v2  ;;  %1518 = vmatpush1.bf16.msra.mxu1 %v3959_v3  ;;  %v223_v2 = vld [vmem:[#allocation5 + $0x7c8] sm:$0xff]  ;;  %v3992_v3 = vcombine.high %v219_v58, %v221_v60  ;;  %v4013_v60 = vcombine.low %v242_v47, %v244_v48 }
  0xb9   :  { %1355 = vmatprep.subr.bf16.mxu0 %v3962_v4  ;;  %1519 = vmatprep.subr.bf16.mxu1 %v3964_v8  ;;  %v225_v4 = vld [vmem:[#allocation5 + $0x7e8] sm:$0xff]  ;;  %v3994_v8 = vcombine.high %v222_v0, %v224_v1  ;;  %v250_v0 = vld [vmem:[#allocation5 + $0x980] sm:$0xff] }
  0xba   :  { %v247_v58 = vld [vmem:[#allocation5 + $0x948] sm:$0xff]  ;;  %v252_v1 = vld [vmem:[#allocation5 + $0x9a0] sm:$0xff] }
  0xbc   :  { %1356 = vmatpush1.bf16.msra.mxu0 %v3961_v10  ;;  %1520 = vmatpush1.bf16.msra.mxu1 %v3963_v11  ;;  %v227_v10 = vld [vmem:[#allocation5 + $0x808] sm:$0xff] }
  0xbd   :  { %1357 = vmatprep.subr.bf16.mxu0 %v3966_v13  ;;  %1521 = vmatprep.subr.bf16.mxu1 %v3968_v17  ;;  %v229_v11 = vld [vmem:[#allocation5 + $0x828] sm:$0xff]  ;;  %v3996_v13 = vcombine.high %v223_v2, %v225_v4  ;;  %v3995_v17 = vcombine.low %v223_v2, %v225_v4  ;;  %v4017_v4 = vcombine.low %v246_v55, %v248_v56 }
  0xbe   :  { %v4000_v23 = vcombine.high %v227_v10, %v229_v11  ;;  %v3999_v27 = vcombine.low %v227_v10, %v229_v11  ;;  %v251_v2 = vld [vmem:[#allocation5 + $0x988] sm:$0xff] }
  0xbf   :  { %v255_v10 = vld [vmem:[#allocation5 + $0x9c8] sm:$0xff] }
  0xc0   :  { %1358 = vmatpush1.bf16.msra.mxu0 %v3965_v19  ;;  %1522 = vmatpush1.bf16.msra.mxu1 %v3967_v20  ;;  %v232_v19 = vld [vmem:[#allocation5 + $0x860] sm:$0xff]  ;;  %v231_v20 = vld [vmem:[#allocation5 + $0x848] sm:$0xff] }
  0xc1   :  { %1359 = vmatprep.subr.bf16.mxu0 %v3970_v21  ;;  %1523 = vmatprep.subr.bf16.mxu1 %v3972_v26  ;;  %v233_v21 = vld [vmem:[#allocation5 + $0x868] sm:$0xff]  ;;  %v3997_v26 = vcombine.low %v226_v6, %v228_v9  ;;  %v4001_v35 = vcombine.low %v230_v16, %v232_v19  ;;  %v4022_v6 = vcombine.high %v250_v0, %v252_v1  ;;  %v256_v9 = vld [vmem:[#allocation5 + $0x9e0] sm:$0xff] }
  0xc2   :  { %v257_v11 = vld [vmem:[#allocation5 + $0x9e8] sm:$0xff] }
  0xc4   :  { %1360 = vmatpush1.bf16.msra.mxu0 %v3969_v28  ;;  %1524 = vmatpush1.bf16.msra.mxu1 %v3971_v29  ;;  %v4002_v28 = vcombine.high %v230_v16, %v232_v19  ;;  %v4004_v29 = vcombine.high %v231_v20, %v233_v21  ;;  %v4028_v16 = vcombine.high %v255_v10, %v257_v11  ;;  %v259_v19 = vld [vmem:[#allocation5 + $0xa08] sm:$0xff] }
  0xc5   :  { %1361 = vmatprep.subr.bf16.mxu0 %v3974_v30  ;;  %1525 = vmatprep.subr.bf16.mxu1 %v3976_v34  ;;  %v234_v30 = vld [vmem:[#allocation5 + $0x880] sm:$0xff]  ;;  %v237_v34 = vld [vmem:[#allocation5 + $0x8a8] sm:$0xff] }
  0xc6   :  { %v4005_v43 = vcombine.low %v234_v30, %v236_v31 }
  0xc8   :  { %1362 = vmatpush1.bf16.msra.mxu0 %v3973_v36  ;;  %1526 = vmatpush1.bf16.msra.mxu1 %v3975_v37  ;;  %v4003_v36 = vcombine.low %v231_v20, %v233_v21  ;;  %v4006_v37 = vcombine.high %v234_v30, %v236_v31  ;;  %v261_v20 = vld [vmem:[#allocation5 + $0xa28] sm:$0xff] }
  0xc9   :  { %1363 = vmatprep.subr.bf16.mxu0 %v3978_v38  ;;  %1527 = vmatprep.subr.bf16.mxu1 %v3980_v42  ;;  %v4008_v38 = vcombine.high %v235_v33, %v237_v34  ;;  %v241_v42 = vld [vmem:[#allocation5 + $0x8e8] sm:$0xff] }
  0xca   :  { %v265_v30 = vld [vmem:[#allocation5 + $0xa68] sm:$0xff] }
  0xcc   :  { %1364 = vmatpush1.bf16.msra.mxu0 %v3977_v44  ;;  %1528 = vmatpush1.bf16.msra.mxu1 %v3979_v45  ;;  %v4007_v44 = vcombine.low %v235_v33, %v237_v34  ;;  %v4010_v45 = vcombine.high %v238_v39, %v240_v40  ;;  %v4031_v33 = vcombine.low %v259_v19, %v261_v20  ;;  %v269_v39 = vld [vmem:[#allocation5 + $0xaa8] sm:$0xff] }
  0xcd   :  { %1365 = vmatprep.subr.bf16.mxu0 %v3982_v46  ;;  %1529 = vmatprep.subr.bf16.mxu1 %v3984_v50  ;;  %v4012_v46 = vcombine.high %v239_v41, %v241_v42  ;;  %v245_v50 = vld [vmem:[#allocation5 + $0x928] sm:$0xff] }
  0xd0   :  { %1366 = vmatpush1.bf16.msra.mxu0 %v3981_v52  ;;  %1530 = vmatpush1.bf16.msra.mxu1 %v3983_v53  ;;  %v4011_v52 = vcombine.low %v239_v41, %v241_v42  ;;  %v4014_v53 = vcombine.high %v242_v47, %v244_v48  ;;  %v273_v47 = vld [vmem:[#allocation5 + $0xae8] sm:$0xff] }
  0xd1   :  { %1367 = vmatprep.subr.bf16.mxu0 %v3986_v54  ;;  %1531 = vmatprep.subr.bf16.mxu1 %v3988_v59  ;;  %v4016_v54 = vcombine.high %v243_v49, %v245_v50  ;;  %v249_v59 = vld [vmem:[#allocation5 + $0x968] sm:$0xff] }
  0xd4   :  { %1368 = vmatpush1.bf16.msra.mxu0 %v3985_v61  ;;  %1532 = vmatpush1.bf16.msra.mxu1 %v3987_v62  ;;  %v4015_v61 = vcombine.low %v243_v49, %v245_v50  ;;  %v4018_v62 = vcombine.high %v246_v55, %v248_v56  ;;  %v277_v55 = vld [vmem:[#allocation5 + $0xb28] sm:$0xff] }
  0xd5   :  { %1369 = vmatprep.subr.bf16.mxu0 %v3990_v63  ;;  %1533 = vmatprep.subr.bf16.mxu1 %v3992_v3  ;;  %v4020_v63 = vcombine.high %v247_v58, %v249_v59  ;;  %v253_v3 = vld [vmem:[#allocation5 + $0x9a8] sm:$0xff] }
  0xd6   :  { %v4023_v14 = vcombine.low %v251_v2, %v253_v3 }
  0xd8   :  { %1370 = vmatpush1.bf16.msra.mxu0 %v3989_v5  ;;  %1534 = vmatpush1.bf16.msra.mxu1 %v3991_v7  ;;  %v4019_v5 = vcombine.low %v247_v58, %v249_v59  ;;  %v4024_v7 = vcombine.high %v251_v2, %v253_v3 }
  0xd9   :  { %1371 = vmatprep.subr.bf16.mxu0 %v3994_v8  ;;  %1535 = vmatprep.subr.bf16.mxu1 %v3996_v13  ;;  %v254_v8 = vld [vmem:[#allocation5 + $0x9c0] sm:$0xff]  ;;  %v4021_v13 = vcombine.low %v250_v0, %v252_v1  ;;  %v281_v0 = vld [vmem:[#allocation5 + $0xb68] sm:$0xff] }
  0xda   :  { %v4025_v21 = vcombine.low %v254_v8, %v256_v9 }
  0xdc   :  { %1372 = vmatpush1.bf16.msra.mxu0 %v3993_v15  ;;  %1536 = vmatpush1.bf16.msra.mxu1 %v3995_v17  ;;  %v4026_v15 = vcombine.high %v254_v8, %v256_v9  ;;  %v258_v17 = vld [vmem:[#allocation5 + $0xa00] sm:$0xff]  ;;  %v285_v8 = vld [vmem:[#allocation5 + $0xba8] sm:$0xff] }
  0xdd   :  { %1382 = vmatprep.subr.bf16.mxu0 %v3998_v18  ;;  %1546 = vmatprep.subr.bf16.mxu1 %v4000_v23  ;;  %v260_v18 = vld [vmem:[#allocation5 + $0xa20] sm:$0xff]  ;;  %v4027_v23 = vcombine.low %v255_v10, %v257_v11 }
  0xde   :  { %v4030_v24 = vcombine.high %v258_v17, %v260_v18  ;;  %v4029_v31 = vcombine.low %v258_v17, %v260_v18  ;;  %v289_v17 = vld [vmem:[#allocation5 + $0xbe8] sm:$0xff] }
  0xdf   :  { %1374 = vmatmul.mubr.bf16.vlgmr.msra.gmra.mrb[0].mxu0 %v4802_v25  ;;  %1538 = vmatmul.mubr.bf16.vlgmr.msra.gmra.mrb[0].mxu1 %v4802_v25 }
  0xe0   :  { %1383 = vmatpush1.bf16.msra.mxu0 %v3997_v26  ;;  %1547 = vmatpush1.bf16.msra.mxu1 %v3999_v27  ;;  %v4032_v26 = vcombine.high %v259_v19, %v261_v20  ;;  %v262_v27 = vld [vmem:[#allocation5 + $0xa40] sm:$0xff] }
  0xe1   :  { %1384 = vmatprep.subr.bf16.mxu0 %v4002_v28  ;;  %1548 = vmatprep.subr.bf16.mxu1 %v4004_v29  ;;  %v264_v28 = vld [vmem:[#allocation5 + $0xa60] sm:$0xff]  ;;  %v263_v29 = vld [vmem:[#allocation5 + $0xa48] sm:$0xff] }
  0xe2   :  { %1414 = vmatprep.mubr.bf16.mxu0 %v4804_v32  ;;  %1578 = vmatprep.mubr.bf16.mxu1 %v4804_v32  ;;  %v4034_v34 = vcombine.high %v262_v27, %v264_v28  ;;  %v4033_v40 = vcombine.low %v262_v27, %v264_v28  ;;  %v4035_v41 = vcombine.low %v263_v29, %v265_v30  ;;  %v293_v27 = vld [vmem:[#allocation5 + $0xc28] sm:$0xff] }
  0xe4   :  { %1385 = vmatpush1.bf16.msra.mxu0 %v4001_v35  ;;  %1549 = vmatpush1.bf16.msra.mxu1 %v4003_v36  ;;  %v4036_v35 = vcombine.high %v263_v29, %v265_v30  ;;  %v266_v36 = vld [vmem:[#allocation5 + $0xa80] sm:$0xff]  ;;  %v88_v29 = vld [vmem:[#allocation2 + $0x20] sm:$0xff] }
  0xe5   :  { %1386 = vmatprep.subr.bf16.mxu0 %v4006_v37  ;;  %1550 = vmatprep.subr.bf16.mxu1 %v4008_v38  ;;  %v268_v37 = vld [vmem:[#allocation5 + $0xaa0] sm:$0xff]  ;;  %v267_v38 = vld [vmem:[#allocation5 + $0xa88] sm:$0xff] }
  0xe6   :  { %v4038_v42 = vcombine.high %v266_v36, %v268_v37  ;;  %v4037_v48 = vcombine.low %v266_v36, %v268_v37  ;;  %v4039_v49 = vcombine.low %v267_v38, %v269_v39  ;;  %v1702_v36 = vld [vmem:[#allocation5 + $0x30] sm:$0xff] }
  0xe8   :  { %1387 = vmatpush1.bf16.msra.mxu0 %v4005_v43  ;;  %1551 = vmatpush1.bf16.msra.mxu1 %v4007_v44  ;;  %v4040_v43 = vcombine.high %v267_v38, %v269_v39  ;;  %v270_v44 = vld [vmem:[#allocation5 + $0xac0] sm:$0xff]  ;;  %v1701_v38 = vld [vmem:[#allocation5 + $0x18] sm:$0xff] }
  0xe9   :  { %1388 = vmatprep.subr.bf16.mxu0 %v4010_v45  ;;  %1552 = vmatprep.subr.bf16.mxu1 %v4012_v46  ;;  %v272_v45 = vld [vmem:[#allocation5 + $0xae0] sm:$0xff]  ;;  %v271_v46 = vld [vmem:[#allocation5 + $0xac8] sm:$0xff]  ;;  %v1703_v39 = vld [vmem:[#allocation5 + $0x38] sm:$0xff] }
  0xea   :  { %v4042_v50 = vcombine.high %v270_v44, %v272_v45  ;;  %v4041_v56 = vcombine.low %v270_v44, %v272_v45  ;;  %v4043_v58 = vcombine.low %v271_v46, %v273_v47  ;;  %v90_v44 = vld [vmem:[#allocation2 + $0x30] sm:$0xff]  ;;  %v1704_v45 = vld [vmem:[#allocation5 + $0x50] sm:$0xff] }
  0xec   :  { %1389 = vmatpush1.bf16.msra.mxu0 %v4009_v51  ;;  %1553 = vmatpush1.bf16.msra.mxu1 %v4011_v52  ;;  %v4044_v51 = vcombine.high %v271_v46, %v273_v47  ;;  %v274_v52 = vld [vmem:[#allocation5 + $0xb00] sm:$0xff]  ;;  %v1706_v46 = vld [vmem:[#allocation5 + $0x70] sm:$0xff]  ;;  %v4816_v47 = vpack.c.bf16 %v90_v44, %v90_v44 }
  0xed   :  { %1390 = vmatprep.subr.bf16.mxu0 %v4014_v53  ;;  %1554 = vmatprep.subr.bf16.mxu1 %v4016_v54  ;;  %v276_v53 = vld [vmem:[#allocation5 + $0xb20] sm:$0xff]  ;;  %v275_v54 = vld [vmem:[#allocation5 + $0xb08] sm:$0xff]  ;;  %v1732_v44 = vld [vmem:[#allocation5 + $0x210] sm:$0xff] }
  0xee   :  { %v4046_v59 = vcombine.high %v274_v52, %v276_v53  ;;  %v4045_v1 = vcombine.low %v274_v52, %v276_v53  ;;  %v4047_v2 = vcombine.low %v275_v54, %v277_v55  ;;  %v4072_v52 = vcombine.high %v1704_v45, %v1706_v46 }
  0xf0   :  { %1391 = vmatpush1.bf16.msra.mxu0 %v4013_v60  ;;  %1555 = vmatpush1.bf16.msra.mxu1 %v4015_v61  ;;  %v4048_v60 = vcombine.high %v275_v54, %v277_v55  ;;  %v278_v61 = vld [vmem:[#allocation5 + $0xb40] sm:$0xff]  ;;  %v1708_v54 = vld [vmem:[#allocation5 + $0x90] sm:$0xff] }
  0xf1   :  { %1392 = vmatprep.subr.bf16.mxu0 %v4018_v62  ;;  %1556 = vmatprep.subr.bf16.mxu1 %v4020_v63  ;;  %v280_v62 = vld [vmem:[#allocation5 + $0xb60] sm:$0xff]  ;;  %v279_v63 = vld [vmem:[#allocation5 + $0xb48] sm:$0xff]  ;;  %v1710_v55 = vld [vmem:[#allocation5 + $0xb0] sm:$0xff] }
  0xf2   :  { %v4050_v3 = vcombine.high %v278_v61, %v280_v62  ;;  %v4049_v9 = vcombine.low %v278_v61, %v280_v62  ;;  %v4051_v10 = vcombine.low %v279_v63, %v281_v0  ;;  %v4076_v61 = vcombine.high %v1708_v54, %v1710_v55 }
  0xf4   :  { %1393 = vmatpush1.bf16.msra.mxu0 %v4017_v4  ;;  %1557 = vmatpush1.bf16.msra.mxu1 %v4019_v5  ;;  %v4052_v4 = vcombine.high %v279_v63, %v281_v0  ;;  %v282_v5 = vld [vmem:[#allocation5 + $0xb80] sm:$0xff]  ;;  %v1712_v63 = vld [vmem:[#allocation5 + $0xd0] sm:$0xff] }
  0xf5   :  { %1394 = vmatprep.subr.bf16.mxu0 %v4022_v6  ;;  %1558 = vmatprep.subr.bf16.mxu1 %v4024_v7  ;;  %v284_v6 = vld [vmem:[#allocation5 + $0xba0] sm:$0xff]  ;;  %v283_v7 = vld [vmem:[#allocation5 + $0xb88] sm:$0xff]  ;;  %v1714_v0 = vld [vmem:[#allocation5 + $0xf0] sm:$0xff] }
  0xf6   :  { %v4054_v11 = vcombine.high %v282_v5, %v284_v6  ;;  %v4053_v18 = vcombine.low %v282_v5, %v284_v6  ;;  %v4055_v19 = vcombine.low %v283_v7, %v285_v8  ;;  %v4080_v5 = vcombine.high %v1712_v63, %v1714_v0 }
  0xf8   :  { %1395 = vmatpush1.bf16.msra.mxu0 %v4021_v13  ;;  %1559 = vmatpush1.bf16.msra.mxu1 %v4023_v14  ;;  %v4056_v13 = vcombine.high %v283_v7, %v285_v8  ;;  %v286_v14 = vld [vmem:[#allocation5 + $0xbc0] sm:$0xff]  ;;  %v1716_v7 = vld [vmem:[#allocation5 + $0x110] sm:$0xff] }
  0xf9   :  { %1396 = vmatprep.subr.bf16.mxu0 %v4026_v15  ;;  %1560 = vmatprep.subr.bf16.mxu1 %v4028_v16  ;;  %v288_v15 = vld [vmem:[#allocation5 + $0xbe0] sm:$0xff]  ;;  %v287_v16 = vld [vmem:[#allocation5 + $0xbc8] sm:$0xff]  ;;  %v1718_v8 = vld [vmem:[#allocation5 + $0x130] sm:$0xff] }
  0xfa   :  { %v4058_v20 = vcombine.high %v286_v14, %v288_v15  ;;  %v4057_v28 = vcombine.low %v286_v14, %v288_v15  ;;  %v4059_v30 = vcombine.low %v287_v16, %v289_v17  ;;  %v4084_v14 = vcombine.high %v1716_v7, %v1718_v8  ;;  %v1720_v15 = vld [vmem:[#allocation5 + $0x150] sm:$0xff] }
  0xfc   :  { %1397 = vmatpush1.bf16.msra.mxu0 %v4025_v21  ;;  %1561 = vmatpush1.bf16.msra.mxu1 %v4027_v23  ;;  %v4060_v21 = vcombine.high %v287_v16, %v289_v17  ;;  %v290_v23 = vld [vmem:[#allocation5 + $0xc00] sm:$0xff]  ;;  %v1722_v16 = vld [vmem:[#allocation5 + $0x170] sm:$0xff]  ;;  %v1721_v17 = vld [vmem:[#allocation5 + $0x158] sm:$0xff] }
  0xfd   :  { %1398 = vmatprep.subr.bf16.mxu0 %v4030_v24  ;;  %1562 = vmatprep.subr.bf16.mxu1 %v4032_v26  ;;  %v292_v24 = vld [vmem:[#allocation5 + $0xc20] sm:$0xff]  ;;  %v291_v26 = vld [vmem:[#allocation5 + $0xc08] sm:$0xff] }
  0xfe   :  { %v4061_v37 = vcombine.low %v290_v23, %v292_v24 }
 0x100   :  { %1399 = vmatpush1.bf16.msra.mxu0 %v4029_v31  ;;  %1563 = vmatpush1.bf16.msra.mxu1 %v4031_v33  ;;  %v4062_v31 = vcombine.high %v290_v23, %v292_v24  ;;  %v4064_v33 = vcombine.high %v291_v26, %v293_v27  ;;  %v1724_v24 = vld [vmem:[#allocation5 + $0x190] sm:$0xff] }
 0x101   :  { %1400 = vmatprep.subr.bf16.mxu0 %v4034_v34  ;;  %1564 = vmatprep.subr.bf16.mxu1 %v4036_v35  ;;  %v4810_v34 = vpack.c.bf16 %v88_v29, %v88_v29  ;;  %v1700_v35 = vld [vmem:[#allocation5 + $0x10] sm:$0xff]  ;;  %v4087_v29 = vcombine.low %v1720_v15, %v1722_v16 }
 0x104   :  { %1401 = vmatpush1.bf16.msra.mxu0 %v4033_v40  ;;  %1565 = vmatpush1.bf16.msra.mxu1 %v4035_v41  ;;  %v4063_v40 = vcombine.low %v291_v26, %v293_v27  ;;  %v4068_v41 = vcombine.high %v1700_v35, %v1702_v36  ;;  %v1726_v26 = vld [vmem:[#allocation5 + $0x1b0] sm:$0xff]  ;;  %v1725_v27 = vld [vmem:[#allocation5 + $0x198] sm:$0xff] }
 0x105   :  { %1402 = vmatprep.subr.bf16.mxu0 %v4038_v42  ;;  %1566 = vmatprep.subr.bf16.mxu1 %v4040_v43  ;;  %v4070_v42 = vcombine.high %v1701_v38, %v1703_v39  ;;  %v4698_v43 = vmov 0  }
 0x108   :  { %1403 = vmatpush1.bf16.msra.mxu0 %v4037_v48  ;;  %1567 = vmatpush1.bf16.msra.mxu1 %v4039_v49  ;;  %v1705_v48 = vld [vmem:[#allocation5 + $0x58] sm:$0xff] }
 0x109   :  { %1404 = vmatprep.subr.bf16.mxu0 %v4042_v50  ;;  %1568 = vmatprep.subr.bf16.mxu1 %v4044_v51  ;;  %v1707_v49 = vld [vmem:[#allocation5 + $0x78] sm:$0xff]  ;;  %v4067_v50 = vcombine.low %v1700_v35, %v1702_v36  ;;  %v4069_v51 = vcombine.low %v1701_v38, %v1703_v39  ;;  %v1728_v35 = vld [vmem:[#allocation5 + $0x1d0] sm:$0xff]  ;;  %v4091_v39 = vcombine.low %v1724_v24, %v1726_v26 }
 0x10a   :  { %v4074_v53 = vcombine.high %v1705_v48, %v1707_v49  ;;  %v1730_v36 = vld [vmem:[#allocation5 + $0x1f0] sm:$0xff]  ;;  %v1731_v38 = vld [vmem:[#allocation5 + $0x1f8] sm:$0xff] }
 0x10c   :  { %1405 = vmatpush1.bf16.msra.mxu0 %v4041_v56  ;;  %1569 = vmatpush1.bf16.msra.mxu1 %v4043_v58  ;;  %v1709_v56 = vld [vmem:[#allocation5 + $0x98] sm:$0xff] }
 0x10d   :  { %1406 = vmatprep.subr.bf16.mxu0 %v4046_v59  ;;  %1570 = vmatprep.subr.bf16.mxu1 %v4048_v60  ;;  %v1711_v58 = vld [vmem:[#allocation5 + $0xb8] sm:$0xff]  ;;  %v4071_v59 = vcombine.low %v1704_v45, %v1706_v46  ;;  %v4073_v60 = vcombine.low %v1705_v48, %v1707_v49  ;;  %v1734_v45 = vld [vmem:[#allocation5 + $0x230] sm:$0xff]  ;;  %v4095_v49 = vcombine.low %v1728_v35, %v1730_v36 }
 0x10e   :  { %v4078_v62 = vcombine.high %v1709_v56, %v1711_v58  ;;  %v1733_v46 = vld [vmem:[#allocation5 + $0x218] sm:$0xff] }
 0x10f   :  { %v1735_v48 = vld [vmem:[#allocation5 + $0x238] sm:$0xff] }
 0x110   :  { %1407 = vmatpush1.bf16.msra.mxu0 %v4045_v1  ;;  %1571 = vmatpush1.bf16.msra.mxu1 %v4047_v2  ;;  %v1713_v1 = vld [vmem:[#allocation5 + $0xd8] sm:$0xff] }
 0x111   :  { %1408 = vmatprep.subr.bf16.mxu0 %v4050_v3  ;;  %1572 = vmatprep.subr.bf16.mxu1 %v4052_v4  ;;  %v1715_v2 = vld [vmem:[#allocation5 + $0xf8] sm:$0xff]  ;;  %v4075_v3 = vcombine.low %v1708_v54, %v1710_v55  ;;  %v4077_v4 = vcombine.low %v1709_v56, %v1711_v58  ;;  %v1738_v54 = vld [vmem:[#allocation5 + $0x270] sm:$0xff]  ;;  %v4099_v58 = vcombine.low %v1732_v44, %v1734_v45 }
 0x112   :  { %v4082_v6 = vcombine.high %v1713_v1, %v1715_v2  ;;  %v1737_v55 = vld [vmem:[#allocation5 + $0x258] sm:$0xff] }
 0x113   :  { %v1739_v56 = vld [vmem:[#allocation5 + $0x278] sm:$0xff] }
 0x114   :  { %1409 = vmatpush1.bf16.msra.mxu0 %v4049_v9  ;;  %1573 = vmatpush1.bf16.msra.mxu1 %v4051_v10  ;;  %v1717_v9 = vld [vmem:[#allocation5 + $0x118] sm:$0xff] }
 0x115   :  { %1410 = vmatprep.subr.bf16.mxu0 %v4054_v11  ;;  %1574 = vmatprep.subr.bf16.mxu1 %v4056_v13  ;;  %v1719_v10 = vld [vmem:[#allocation5 + $0x138] sm:$0xff]  ;;  %v4079_v11 = vcombine.low %v1712_v63, %v1714_v0  ;;  %v4081_v13 = vcombine.low %v1713_v1, %v1715_v2  ;;  %v1742_v63 = vld [vmem:[#allocation5 + $0x2b0] sm:$0xff] }
 0x116   :  { %v1741_v0 = vld [vmem:[#allocation5 + $0x298] sm:$0xff] }
 0x117   :  { %v1743_v1 = vld [vmem:[#allocation5 + $0x2b8] sm:$0xff] }
 0x118   :  { %1411 = vmatpush1.bf16.msra.mxu0 %v4053_v18  ;;  %1575 = vmatpush1.bf16.msra.mxu1 %v4055_v19  ;;  %v1723_v18 = vld [vmem:[#allocation5 + $0x178] sm:$0xff]  ;;  %v4083_v19 = vcombine.low %v1716_v7, %v1718_v8  ;;  %v1746_v7 = vld [vmem:[#allocation5 + $0x2f0] sm:$0xff] }
 0x119   :  { %1412 = vmatprep.subr.bf16.mxu0 %v4058_v20  ;;  %1576 = vmatprep.subr.bf16.mxu1 %v4060_v21  ;;  %v4085_v20 = vcombine.low %v1717_v9, %v1719_v10  ;;  %v4088_v21 = vcombine.high %v1720_v15, %v1722_v16  ;;  %v4090_v23 = vcombine.high %v1721_v17, %v1723_v18  ;;  %v1745_v8 = vld [vmem:[#allocation5 + $0x2d8] sm:$0xff]  ;;  %v1750_v15 = vld [vmem:[#allocation5 + $0x330] sm:$0xff] }
 0x11a   :  { %v1749_v16 = vld [vmem:[#allocation5 + $0x318] sm:$0xff] }
 0x11c   :  { %1413 = vmatpush1.bf16.msra.mxu0 %v4057_v28  ;;  %1577 = vmatpush1.bf16.msra.mxu1 %v4059_v30  ;;  %v1727_v28 = vld [vmem:[#allocation5 + $0x1b8] sm:$0xff]  ;;  %v4089_v30 = vcombine.low %v1721_v17, %v1723_v18 }
 0x11d   :  { %1423 = vmatprep.subr.bf16.mxu0 %v4062_v31  ;;  %1587 = vmatprep.subr.bf16.mxu1 %v4064_v33  ;;  %v4092_v31 = vcombine.high %v1724_v24, %v1726_v26  ;;  %v4094_v33 = vcombine.high %v1725_v27, %v1727_v28  ;;  %v1751_v17 = vld [vmem:[#allocation5 + $0x338] sm:$0xff]  ;;  %v1754_v24 = vld [vmem:[#allocation5 + $0x370] sm:$0xff] }
 0x11e   :  { %v1753_v26 = vld [vmem:[#allocation5 + $0x358] sm:$0xff] }
 0x11f   :  { %1415 = vmatmul.mubr.bf16.vlgmr.msra.gmra.mrb[0].mxu0 %v4810_v34  ;;  %1579 = vmatmul.mubr.bf16.vlgmr.msra.gmra.mrb[0].mxu1 %v4810_v34 }
 0x120   :  { %1424 = vmatpush1.bf16.msra.mxu0 %v4061_v37  ;;  %1588 = vmatpush1.bf16.msra.mxu1 %v4063_v40  ;;  %v1729_v37 = vld [vmem:[#allocation5 + $0x1d8] sm:$0xff]  ;;  %v4093_v40 = vcombine.low %v1725_v27, %v1727_v28 }
 0x121   :  { %1455 = vmatprep.mubr.bf16.mxu0 %v4698_v43  ;;  %1619 = vmatprep.mubr.bf16.mxu1 %v4698_v43  ;;  %v1755_v27 = vld [vmem:[#allocation5 + $0x378] sm:$0xff] }
 0x122   :  { %2898 = vmatprep.subr.bf16.mxu0 %v4068_v41  ;;  %3062 = vmatprep.subr.bf16.mxu1 %v4070_v42  ;;  %v4096_v41 = vcombine.high %v1728_v35, %v1730_v36  ;;  %v4098_v42 = vcombine.high %v1729_v37, %v1731_v38  ;;  %v1758_v35 = vld [vmem:[#allocation5 + $0x3b0] sm:$0xff]  ;;  %v1757_v36 = vld [vmem:[#allocation5 + $0x398] sm:$0xff] }
 0x12b   :  { %4065 = vmatmul.mubr.msk.bf16.vlgmr.msra.gmra.mrb[0].mxu0 %vm1296_vm0, %v4816_v47  ;;  %4066 = vmatmul.mubr.msk.bf16.vlgmr.msra.gmra.mrb[0].mxu1 %vm1296_vm0, %v4816_v47 }
 0x12c   :  { %2899 = vmatpush1.bf16.msra.mxu0 %v4067_v50  ;;  %3063 = vmatpush1.bf16.msra.mxu1 %v4069_v51  ;;  %v4097_v50 = vcombine.low %v1729_v37, %v1731_v38  ;;  %v4100_v51 = vcombine.high %v1732_v44, %v1734_v45  ;;  %v1759_v37 = vld [vmem:[#allocation5 + $0x3b8] sm:$0xff]  ;;  %v1762_v44 = vld [vmem:[#allocation5 + $0x3f0] sm:$0xff] }
 0x12d   :  { %2900 = vmatprep.subr.bf16.mxu0 %v4072_v52  ;;  %3064 = vmatprep.subr.bf16.mxu1 %v4074_v53  ;;  %v4102_v52 = vcombine.high %v1733_v46, %v1735_v48  ;;  %v1736_v53 = vld [vmem:[#allocation5 + $0x250] sm:$0xff]  ;;  %v1761_v45 = vld [vmem:[#allocation5 + $0x3d8] sm:$0xff] }
 0x12e   :  { %2930 = vmatprep.mubr.bf16.mxu0 %v4790_v57  ;;  %3094 = vmatprep.mubr.bf16.mxu1 %v4790_v57  ;;  %v4086_v57 = vcombine.high %v1717_v9, %v1719_v10  ;;  %v4103_v2 = vcombine.low %v1736_v53, %v1738_v54  ;;  %v1747_v9 = vld [vmem:[#allocation5 + $0x2f8] sm:$0xff] }
 0x130   :  { %2901 = vmatpush1.bf16.msra.mxu0 %v4071_v59  ;;  %3065 = vmatpush1.bf16.msra.mxu1 %v4073_v60  ;;  %v4101_v59 = vcombine.low %v1733_v46, %v1735_v48  ;;  %v4104_v60 = vcombine.high %v1736_v53, %v1738_v54  ;;  %v1763_v46 = vld [vmem:[#allocation5 + $0x3f8] sm:$0xff]  ;;  %v1766_v53 = vld [vmem:[#allocation5 + $0x430] sm:$0xff] }
 0x131   :  { %2902 = vmatprep.subr.bf16.mxu0 %v4076_v61  ;;  %3066 = vmatprep.subr.bf16.mxu1 %v4078_v62  ;;  %v4106_v61 = vcombine.high %v1737_v55, %v1739_v56  ;;  %v1740_v62 = vld [vmem:[#allocation5 + $0x290] sm:$0xff]  ;;  %v1765_v54 = vld [vmem:[#allocation5 + $0x418] sm:$0xff] }
 0x132   :  { %v4107_v10 = vcombine.low %v1740_v62, %v1742_v63 }
 0x134   :  { %2903 = vmatpush1.bf16.msra.mxu0 %v4075_v3  ;;  %3067 = vmatpush1.bf16.msra.mxu1 %v4077_v4  ;;  %v4105_v3 = vcombine.low %v1737_v55, %v1739_v56  ;;  %v4108_v4 = vcombine.high %v1740_v62, %v1742_v63  ;;  %v1767_v55 = vld [vmem:[#allocation5 + $0x438] sm:$0xff]  ;;  %v1770_v62 = vld [vmem:[#allocation5 + $0x470] sm:$0xff] }
 0x135   :  { %2904 = vmatprep.subr.bf16.mxu0 %v4080_v5  ;;  %3068 = vmatprep.subr.bf16.mxu1 %v4082_v6  ;;  %v4110_v5 = vcombine.high %v1741_v0, %v1743_v1  ;;  %v1744_v6 = vld [vmem:[#allocation5 + $0x2d0] sm:$0xff]  ;;  %v1769_v63 = vld [vmem:[#allocation5 + $0x458] sm:$0xff] }
 0x136   :  { %v4111_v18 = vcombine.low %v1744_v6, %v1746_v7 }
 0x138   :  { %2905 = vmatpush1.bf16.msra.mxu0 %v4079_v11  ;;  %3069 = vmatpush1.bf16.msra.mxu1 %v4081_v13  ;;  %v4109_v11 = vcombine.low %v1741_v0, %v1743_v1  ;;  %v4112_v13 = vcombine.high %v1744_v6, %v1746_v7  ;;  %v1771_v0 = vld [vmem:[#allocation5 + $0x478] sm:$0xff]  ;;  %v1774_v6 = vld [vmem:[#allocation5 + $0x4b0] sm:$0xff] }
 0x139   :  { %2906 = vmatprep.subr.bf16.mxu0 %v4084_v14  ;;  %3070 = vmatprep.subr.bf16.mxu1 %v4086_v57  ;;  %v4114_v14 = vcombine.high %v1745_v8, %v1747_v9  ;;  %v1748_v57 = vld [vmem:[#allocation5 + $0x310] sm:$0xff]  ;;  %v1773_v7 = vld [vmem:[#allocation5 + $0x498] sm:$0xff] }
 0x13a   :  { %v4115_v28 = vcombine.low %v1748_v57, %v1750_v15 }
 0x13c   :  { %2907 = vmatpush1.bf16.msra.mxu0 %v4083_v19  ;;  %3071 = vmatpush1.bf16.msra.mxu1 %v4085_v20  ;;  %v4113_v19 = vcombine.low %v1745_v8, %v1747_v9  ;;  %v4116_v20 = vcombine.high %v1748_v57, %v1750_v15  ;;  %v1775_v8 = vld [vmem:[#allocation5 + $0x4b8] sm:$0xff]  ;;  %v1778_v57 = vld [vmem:[#allocation5 + $0x4f0] sm:$0xff] }
 0x13d   :  { %2908 = vmatprep.subr.bf16.mxu0 %v4088_v21  ;;  %3072 = vmatprep.subr.bf16.mxu1 %v4090_v23  ;;  %v4118_v21 = vcombine.high %v1749_v16, %v1751_v17  ;;  %v1752_v23 = vld [vmem:[#allocation5 + $0x350] sm:$0xff]  ;;  %v1777_v15 = vld [vmem:[#allocation5 + $0x4d8] sm:$0xff] }
 0x13e   :  { %v4119_v38 = vcombine.low %v1752_v23, %v1754_v24 }
 0x140   :  { %2909 = vmatpush1.bf16.msra.mxu0 %v4087_v29  ;;  %3073 = vmatpush1.bf16.msra.mxu1 %v4089_v30  ;;  %v4117_v29 = vcombine.low %v1749_v16, %v1751_v17  ;;  %v4120_v30 = vcombine.high %v1752_v23, %v1754_v24  ;;  %v1779_v16 = vld [vmem:[#allocation5 + $0x4f8] sm:$0xff] }
 0x141   :  { %2910 = vmatprep.subr.bf16.mxu0 %v4092_v31  ;;  %3074 = vmatprep.subr.bf16.mxu1 %v4094_v33  ;;  %v4122_v31 = vcombine.high %v1753_v26, %v1755_v27  ;;  %v1756_v33 = vld [vmem:[#allocation5 + $0x390] sm:$0xff]  ;;  %v1781_v23 = vld [vmem:[#allocation5 + $0x518] sm:$0xff] }
 0x142   :  { %v4123_v48 = vcombine.low %v1756_v33, %v1758_v35  ;;  %v1783_v24 = vld [vmem:[#allocation5 + $0x538] sm:$0xff] }
 0x144   :  { %2911 = vmatpush1.bf16.msra.mxu0 %v4091_v39  ;;  %3075 = vmatpush1.bf16.msra.mxu1 %v4093_v40  ;;  %v4121_v39 = vcombine.low %v1753_v26, %v1755_v27  ;;  %v4124_v40 = vcombine.high %v1756_v33, %v1758_v35  ;;  %v4145_v27 = vcombine.low %v1777_v15, %v1779_v16  ;;  %v1787_v33 = vld [vmem:[#allocation5 + $0x578] sm:$0xff] }
 0x145   :  { %2912 = vmatprep.subr.bf16.mxu0 %v4096_v41  ;;  %3076 = vmatprep.subr.bf16.mxu1 %v4098_v42  ;;  %v4126_v41 = vcombine.high %v1757_v36, %v1759_v37  ;;  %v1760_v42 = vld [vmem:[#allocation5 + $0x3d0] sm:$0xff] }
 0x146   :  { %v4127_v56 = vcombine.low %v1760_v42, %v1762_v44 }
 0x148   :  { %2913 = vmatpush1.bf16.msra.mxu0 %v4095_v49  ;;  %3077 = vmatpush1.bf16.msra.mxu1 %v4097_v50  ;;  %v4125_v49 = vcombine.low %v1757_v36, %v1759_v37  ;;  %v4128_v50 = vcombine.high %v1760_v42, %v1762_v44  ;;  %v4149_v36 = vcombine.low %v1781_v23, %v1783_v24  ;;  %v1791_v42 = vld [vmem:[#allocation5 + $0x5b8] sm:$0xff] }
 0x149   :  { %2914 = vmatprep.subr.bf16.mxu0 %v4100_v51  ;;  %3078 = vmatprep.subr.bf16.mxu1 %v4102_v52  ;;  %v4130_v51 = vcombine.high %v1761_v45, %v1763_v46  ;;  %v1764_v52 = vld [vmem:[#allocation5 + $0x410] sm:$0xff] }
 0x14a   :  { %v4131_v1 = vcombine.low %v1764_v52, %v1766_v53 }
 0x14c   :  { %2915 = vmatpush1.bf16.msra.mxu0 %v4099_v58  ;;  %3079 = vmatpush1.bf16.msra.mxu1 %v4101_v59  ;;  %v4129_v58 = vcombine.low %v1761_v45, %v1763_v46  ;;  %v4132_v59 = vcombine.high %v1764_v52, %v1766_v53  ;;  %v1795_v52 = vld [vmem:[#allocation5 + $0x5f8] sm:$0xff] }
 0x14d   :  { %2916 = vmatprep.subr.bf16.mxu0 %v4104_v60  ;;  %3080 = vmatprep.subr.bf16.mxu1 %v4106_v61  ;;  %v4134_v60 = vcombine.high %v1765_v54, %v1767_v55  ;;  %v1768_v61 = vld [vmem:[#allocation5 + $0x450] sm:$0xff] }
 0x14e   :  { %v4135_v9 = vcombine.low %v1768_v61, %v1770_v62 }
 0x150   :  { %2917 = vmatpush1.bf16.msra.mxu0 %v4103_v2  ;;  %3081 = vmatpush1.bf16.msra.mxu1 %v4105_v3  ;;  %v4133_v2 = vcombine.low %v1765_v54, %v1767_v55  ;;  %v4136_v3 = vcombine.high %v1768_v61, %v1770_v62  ;;  %v1799_v61 = vld [vmem:[#allocation5 + $0x638] sm:$0xff] }
 0x151   :  { %2918 = vmatprep.subr.bf16.mxu0 %v4108_v4  ;;  %3082 = vmatprep.subr.bf16.mxu1 %v4110_v5  ;;  %v4138_v4 = vcombine.high %v1769_v63, %v1771_v0  ;;  %v1772_v5 = vld [vmem:[#allocation5 + $0x490] sm:$0xff] }
 0x152   :  { %v4139_v17 = vcombine.low %v1772_v5, %v1774_v6 }
 0x154   :  { %2919 = vmatpush1.bf16.msra.mxu0 %v4107_v10  ;;  %3083 = vmatpush1.bf16.msra.mxu1 %v4109_v11  ;;  %v4137_v10 = vcombine.low %v1769_v63, %v1771_v0  ;;  %v4140_v11 = vcombine.high %v1772_v5, %v1774_v6  ;;  %v1803_v5 = vld [vmem:[#allocation5 + $0x678] sm:$0xff] }
 0x155   :  { %2920 = vmatprep.subr.bf16.mxu0 %v4112_v13  ;;  %3084 = vmatprep.subr.bf16.mxu1 %v4114_v14  ;;  %v4142_v13 = vcombine.high %v1773_v7, %v1775_v8  ;;  %v1776_v14 = vld [vmem:[#allocation5 + $0x4d0] sm:$0xff] }
 0x156   :  { %v4143_v26 = vcombine.low %v1776_v14, %v1778_v57 }
 0x158   :  { %2921 = vmatpush1.bf16.msra.mxu0 %v4111_v18  ;;  %3085 = vmatpush1.bf16.msra.mxu1 %v4113_v19  ;;  %v4144_v18 = vcombine.high %v1776_v14, %v1778_v57  ;;  %v4146_v19 = vcombine.high %v1777_v15, %v1779_v16  ;;  %v1807_v14 = vld [vmem:[#allocation5 + $0x6b8] sm:$0xff] }
 0x159   :  { %2922 = vmatprep.subr.bf16.mxu0 %v4116_v20  ;;  %3086 = vmatprep.subr.bf16.mxu1 %v4118_v21  ;;  %v1780_v20 = vld [vmem:[#allocation5 + $0x510] sm:$0xff] }
 0x15a   :  { %v1782_v21 = vld [vmem:[#allocation5 + $0x530] sm:$0xff] }
 0x15b   :  { %v4147_v35 = vcombine.low %v1780_v20, %v1782_v21 }
 0x15c   :  { %2923 = vmatpush1.bf16.msra.mxu0 %v4115_v28  ;;  %3087 = vmatpush1.bf16.msra.mxu1 %v4117_v29  ;;  %v4148_v28 = vcombine.high %v1780_v20, %v1782_v21  ;;  %v1784_v29 = vld [vmem:[#allocation5 + $0x550] sm:$0xff]  ;;  %v1811_v20 = vld [vmem:[#allocation5 + $0x6f8] sm:$0xff] }
 0x15d   :  { %2924 = vmatprep.subr.bf16.mxu0 %v4120_v30  ;;  %3088 = vmatprep.subr.bf16.mxu1 %v4122_v31  ;;  %v1786_v30 = vld [vmem:[#allocation5 + $0x570] sm:$0xff]  ;;  %v1785_v31 = vld [vmem:[#allocation5 + $0x558] sm:$0xff] }
 0x15e   :  { %v4152_v37 = vcombine.high %v1784_v29, %v1786_v30  ;;  %v4151_v44 = vcombine.low %v1784_v29, %v1786_v30  ;;  %v4153_v45 = vcombine.low %v1785_v31, %v1787_v33  ;;  %v1815_v29 = vld [vmem:[#allocation5 + $0x738] sm:$0xff] }
 0x160   :  { %2925 = vmatpush1.bf16.msra.mxu0 %v4119_v38  ;;  %3089 = vmatpush1.bf16.msra.mxu1 %v4121_v39  ;;  %v4154_v38 = vcombine.high %v1785_v31, %v1787_v33  ;;  %v1788_v39 = vld [vmem:[#allocation5 + $0x590] sm:$0xff] }
 0x161   :  { %2926 = vmatprep.subr.bf16.mxu0 %v4124_v40  ;;  %3090 = vmatprep.subr.bf16.mxu1 %v4126_v41  ;;  %v1790_v40 = vld [vmem:[#allocation5 + $0x5b0] sm:$0xff]  ;;  %v1789_v41 = vld [vmem:[#allocation5 + $0x598] sm:$0xff] }
 0x162   :  { %v4156_v46 = vcombine.high %v1788_v39, %v1790_v40  ;;  %v4155_v53 = vcombine.low %v1788_v39, %v1790_v40  ;;  %v4157_v54 = vcombine.low %v1789_v41, %v1791_v42  ;;  %v1819_v39 = vld [vmem:[#allocation5 + $0x778] sm:$0xff] }
 0x164   :  { %2927 = vmatpush1.bf16.msra.mxu0 %v4123_v48  ;;  %3091 = vmatpush1.bf16.msra.mxu1 %v4125_v49  ;;  %v4158_v48 = vcombine.high %v1789_v41, %v1791_v42  ;;  %v1792_v49 = vld [vmem:[#allocation5 + $0x5d0] sm:$0xff] }
 0x165   :  { %2928 = vmatprep.subr.bf16.mxu0 %v4128_v50  ;;  %3092 = vmatprep.subr.bf16.mxu1 %v4130_v51  ;;  %v1794_v50 = vld [vmem:[#allocation5 + $0x5f0] sm:$0xff]  ;;  %v1793_v51 = vld [vmem:[#allocation5 + $0x5d8] sm:$0xff] }
 0x166   :  { %v4160_v55 = vcombine.high %v1792_v49, %v1794_v50  ;;  %v4159_v62 = vcombine.low %v1792_v49, %v1794_v50  ;;  %v4161_v63 = vcombine.low %v1793_v51, %v1795_v52  ;;  %v1823_v49 = vld [vmem:[#allocation5 + $0x7b8] sm:$0xff] }
 0x168   :  { %2929 = vmatpush1.bf16.msra.mxu0 %v4127_v56  ;;  %3093 = vmatpush1.bf16.msra.mxu1 %v4129_v58  ;;  %v4162_v56 = vcombine.high %v1793_v51, %v1795_v52  ;;  %v1796_v58 = vld [vmem:[#allocation5 + $0x610] sm:$0xff] }
 0x169   :  { %2939 = vmatprep.subr.bf16.mxu0 %v4132_v59  ;;  %3103 = vmatprep.subr.bf16.mxu1 %v4134_v60  ;;  %v1798_v59 = vld [vmem:[#allocation5 + $0x630] sm:$0xff]  ;;  %v1797_v60 = vld [vmem:[#allocation5 + $0x618] sm:$0xff] }
 0x16a   :  { %v4164_v0 = vcombine.high %v1796_v58, %v1798_v59  ;;  %v4163_v6 = vcombine.low %v1796_v58, %v1798_v59  ;;  %v1827_v58 = vld [vmem:[#allocation5 + $0x7f8] sm:$0xff] }
 0x16b   :  { %2931 = vmatmul.mubr.bf16.vlgmr.msra.gmra.mrb[4].mxu0 %v4794_v12  ;;  %3095 = vmatmul.mubr.bf16.vlgmr.msra.gmra.mrb[4].mxu1 %v4794_v12  ;;  %v4141_v12 = vcombine.low %v1773_v7, %v1775_v8  ;;  %v4165_v7 = vcombine.low %v1797_v60, %v1799_v61 }
 0x16c   :  { %2940 = vmatpush1.bf16.msra.mxu0 %v4131_v1  ;;  %3104 = vmatpush1.bf16.msra.mxu1 %v4133_v2  ;;  %v4166_v1 = vcombine.high %v1797_v60, %v1799_v61  ;;  %v1800_v2 = vld [vmem:[#allocation5 + $0x650] sm:$0xff] }
 0x16d   :  { %2941 = vmatprep.subr.bf16.mxu0 %v4136_v3  ;;  %3105 = vmatprep.subr.bf16.mxu1 %v4138_v4  ;;  %v1802_v3 = vld [vmem:[#allocation5 + $0x670] sm:$0xff]  ;;  %v1801_v4 = vld [vmem:[#allocation5 + $0x658] sm:$0xff] }
 0x16e   :  { %2971 = vmatprep.mubr.bf16.mxu0 %v4796_v22  ;;  %3135 = vmatprep.mubr.bf16.mxu1 %v4796_v22  ;;  %v4150_v22 = vcombine.high %v1781_v23, %v1783_v24  ;;  %v4168_v8 = vcombine.high %v1800_v2, %v1802_v3  ;;  %v4167_v57 = vcombine.low %v1800_v2, %v1802_v3  ;;  %v1831_v2 = vld [vmem:[#allocation5 + $0x838] sm:$0xff] }
 0x16f   :  { %v4169_v15 = vcombine.low %v1801_v4, %v1803_v5 }
 0x170   :  { %2942 = vmatpush1.bf16.msra.mxu0 %v4135_v9  ;;  %3106 = vmatpush1.bf16.msra.mxu1 %v4137_v10  ;;  %v4170_v9 = vcombine.high %v1801_v4, %v1803_v5  ;;  %v1804_v10 = vld [vmem:[#allocation5 + $0x690] sm:$0xff] }
 0x171   :  { %2943 = vmatprep.subr.bf16.mxu0 %v4140_v11  ;;  %3107 = vmatprep.subr.bf16.mxu1 %v4142_v13  ;;  %v1806_v11 = vld [vmem:[#allocation5 + $0x6b0] sm:$0xff]  ;;  %v1805_v13 = vld [vmem:[#allocation5 + $0x698] sm:$0xff] }
 0x172   :  { %v4172_v16 = vcombine.high %v1804_v10, %v1806_v11  ;;  %v4171_v21 = vcombine.low %v1804_v10, %v1806_v11  ;;  %v4173_v23 = vcombine.low %v1805_v13, %v1807_v14  ;;  %v1835_v10 = vld [vmem:[#allocation5 + $0x878] sm:$0xff] }
 0x174   :  { %2944 = vmatpush1.bf16.msra.mxu0 %v4139_v17  ;;  %3108 = vmatpush1.bf16.msra.mxu1 %v4141_v12  ;;  %v4174_v17 = vcombine.high %v1805_v13, %v1807_v14  ;;  %v1808_v12 = vld [vmem:[#allocation5 + $0x6d0] sm:$0xff] }
 0x175   :  { %2945 = vmatprep.subr.bf16.mxu0 %v4144_v18  ;;  %3109 = vmatprep.subr.bf16.mxu1 %v4146_v19  ;;  %v1810_v18 = vld [vmem:[#allocation5 + $0x6f0] sm:$0xff]  ;;  %v1809_v19 = vld [vmem:[#allocation5 + $0x6d8] sm:$0xff] }
 0x176   :  { %v4176_v24 = vcombine.high %v1808_v12, %v1810_v18  ;;  %v4175_v30 = vcombine.low %v1808_v12, %v1810_v18  ;;  %v4177_v31 = vcombine.low %v1809_v19, %v1811_v20  ;;  %v1839_v12 = vld [vmem:[#allocation5 + $0x8b8] sm:$0xff] }
 0x178   :  { %2946 = vmatpush1.bf16.msra.mxu0 %v4143_v26  ;;  %3110 = vmatpush1.bf16.msra.mxu1 %v4145_v27  ;;  %v4178_v26 = vcombine.high %v1809_v19, %v1811_v20  ;;  %v1812_v27 = vld [vmem:[#allocation5 + $0x710] sm:$0xff] }
 0x179   :  { %2947 = vmatprep.subr.bf16.mxu0 %v4148_v28  ;;  %3111 = vmatprep.subr.bf16.mxu1 %v4150_v22  ;;  %v1814_v28 = vld [vmem:[#allocation5 + $0x730] sm:$0xff]  ;;  %v1813_v22 = vld [vmem:[#allocation5 + $0x718] sm:$0xff] }
 0x17a   :  { %v4180_v33 = vcombine.high %v1812_v27, %v1814_v28  ;;  %v4179_v40 = vcombine.low %v1812_v27, %v1814_v28  ;;  %v4181_v41 = vcombine.low %v1813_v22, %v1815_v29  ;;  %v1843_v27 = vld [vmem:[#allocation5 + $0x8f8] sm:$0xff] }
 0x17c   :  { %2948 = vmatpush1.bf16.msra.mxu0 %v4147_v35  ;;  %3112 = vmatpush1.bf16.msra.mxu1 %v4149_v36  ;;  %v4182_v35 = vcombine.high %v1813_v22, %v1815_v29  ;;  %v1816_v36 = vld [vmem:[#allocation5 + $0x750] sm:$0xff] }
 0x17d   :  { %2949 = vmatprep.subr.bf16.mxu0 %v4152_v37  ;;  %3113 = vmatprep.subr.bf16.mxu1 %v4154_v38  ;;  %v1818_v37 = vld [vmem:[#allocation5 + $0x770] sm:$0xff]  ;;  %v1817_v38 = vld [vmem:[#allocation5 + $0x758] sm:$0xff] }
 0x17e   :  { %v4184_v42 = vcombine.high %v1816_v36, %v1818_v37  ;;  %v4183_v50 = vcombine.low %v1816_v36, %v1818_v37  ;;  %v4185_v51 = vcombine.low %v1817_v38, %v1819_v39 }
 0x180   :  { %2950 = vmatpush1.bf16.msra.mxu0 %v4151_v44  ;;  %3114 = vmatpush1.bf16.msra.mxu1 %v4153_v45  ;;  %v4186_v44 = vcombine.high %v1817_v38, %v1819_v39  ;;  %v1820_v45 = vld [vmem:[#allocation5 + $0x790] sm:$0xff] }
 0x181   :  { %2951 = vmatprep.subr.bf16.mxu0 %v4156_v46  ;;  %3115 = vmatprep.subr.bf16.mxu1 %v4158_v48  ;;  %v1822_v46 = vld [vmem:[#allocation5 + $0x7b0] sm:$0xff]  ;;  %v1821_v48 = vld [vmem:[#allocation5 + $0x798] sm:$0xff] }
 0x182   :  { %v4188_v52 = vcombine.high %v1820_v45, %v1822_v46  ;;  %v4187_v59 = vcombine.low %v1820_v45, %v1822_v46  ;;  %v4189_v60 = vcombine.low %v1821_v48, %v1823_v49  ;;  %v1848_v39 = vld [vmem:[#allocation5 + $0x950] sm:$0xff] }
 0x184   :  { %2952 = vmatpush1.bf16.msra.mxu0 %v4155_v53  ;;  %3116 = vmatpush1.bf16.msra.mxu1 %v4157_v54  ;;  %v4190_v53 = vcombine.high %v1821_v48, %v1823_v49  ;;  %v1824_v54 = vld [vmem:[#allocation5 + $0x7d0] sm:$0xff] }
 0x185   :  { %2953 = vmatprep.subr.bf16.mxu0 %v4160_v55  ;;  %3117 = vmatprep.subr.bf16.mxu1 %v4162_v56  ;;  %v1826_v55 = vld [vmem:[#allocation5 + $0x7f0] sm:$0xff]  ;;  %v1825_v56 = vld [vmem:[#allocation5 + $0x7d8] sm:$0xff] }
 0x186   :  { %v4192_v61 = vcombine.high %v1824_v54, %v1826_v55  ;;  %v4191_v3 = vcombine.low %v1824_v54, %v1826_v55  ;;  %v4193_v4 = vcombine.low %v1825_v56, %v1827_v58  ;;  %v1852_v49 = vld [vmem:[#allocation5 + $0x990] sm:$0xff] }
 0x188   :  { %2954 = vmatpush1.bf16.msra.mxu0 %v4159_v62  ;;  %3118 = vmatpush1.bf16.msra.mxu1 %v4161_v63  ;;  %v4194_v62 = vcombine.high %v1825_v56, %v1827_v58  ;;  %v1828_v63 = vld [vmem:[#allocation5 + $0x810] sm:$0xff] }
 0x189   :  { %2955 = vmatprep.subr.bf16.mxu0 %v4164_v0  ;;  %3119 = vmatprep.subr.bf16.mxu1 %v4166_v1  ;;  %v1830_v0 = vld [vmem:[#allocation5 + $0x830] sm:$0xff]  ;;  %v1829_v1 = vld [vmem:[#allocation5 + $0x818] sm:$0xff] }
 0x18a   :  { %v4196_v5 = vcombine.high %v1828_v63, %v1830_v0  ;;  %v4195_v11 = vcombine.low %v1828_v63, %v1830_v0  ;;  %v4197_v13 = vcombine.low %v1829_v1, %v1831_v2  ;;  %v1856_v58 = vld [vmem:[#allocation5 + $0x9d0] sm:$0xff] }
 0x18c   :  { %2956 = vmatpush1.bf16.msra.mxu0 %v4163_v6  ;;  %3120 = vmatpush1.bf16.msra.mxu1 %v4165_v7  ;;  %v4198_v6 = vcombine.high %v1829_v1, %v1831_v2  ;;  %v1832_v7 = vld [vmem:[#allocation5 + $0x850] sm:$0xff] }
 0x18d   :  { %2957 = vmatprep.subr.bf16.mxu0 %v4168_v8  ;;  %3121 = vmatprep.subr.bf16.mxu1 %v4170_v9  ;;  %v1834_v8 = vld [vmem:[#allocation5 + $0x870] sm:$0xff]  ;;  %v1833_v9 = vld [vmem:[#allocation5 + $0x858] sm:$0xff] }
 0x18e   :  { %v4200_v14 = vcombine.high %v1832_v7, %v1834_v8  ;;  %v4199_v18 = vcombine.low %v1832_v7, %v1834_v8  ;;  %v4201_v19 = vcombine.low %v1833_v9, %v1835_v10  ;;  %v1860_v2 = vld [vmem:[#allocation5 + $0xa10] sm:$0xff] }
 0x190   :  { %2958 = vmatpush1.bf16.msra.mxu0 %v4167_v57  ;;  %3122 = vmatpush1.bf16.msra.mxu1 %v4169_v15  ;;  %v4202_v57 = vcombine.high %v1833_v9, %v1835_v10  ;;  %v1836_v15 = vld [vmem:[#allocation5 + $0x890] sm:$0xff] }
 0x191   :  { %2959 = vmatprep.subr.bf16.mxu0 %v4172_v16  ;;  %3123 = vmatprep.subr.bf16.mxu1 %v4174_v17  ;;  %v1838_v16 = vld [vmem:[#allocation5 + $0x8b0] sm:$0xff]  ;;  %v1837_v17 = vld [vmem:[#allocation5 + $0x898] sm:$0xff] }
 0x192   :  { %v4204_v20 = vcombine.high %v1836_v15, %v1838_v16  ;;  %v4203_v28 = vcombine.low %v1836_v15, %v1838_v16  ;;  %v1864_v10 = vld [vmem:[#allocation5 + $0xa50] sm:$0xff] }
 0x194   :  { %2960 = vmatpush1.bf16.msra.mxu0 %v4171_v21  ;;  %3124 = vmatpush1.bf16.msra.mxu1 %v4173_v23  ;;  %v4206_v21 = vcombine.high %v1837_v17, %v1839_v12  ;;  %v1840_v23 = vld [vmem:[#allocation5 + $0x8d0] sm:$0xff] }
 0x195   :  { %2961 = vmatprep.subr.bf16.mxu0 %v4176_v24  ;;  %3125 = vmatprep.subr.bf16.mxu1 %v4178_v26  ;;  %v1842_v24 = vld [vmem:[#allocation5 + $0x8f0] sm:$0xff]  ;;  %v1841_v26 = vld [vmem:[#allocation5 + $0x8d8] sm:$0xff] }
 0x196   :  { %v4208_v22 = vcombine.high %v1840_v23, %v1842_v24  ;;  %v4210_v29 = vcombine.high %v1841_v26, %v1843_v27  ;;  %v4207_v36 = vcombine.low %v1840_v23, %v1842_v24  ;;  %v4209_v37 = vcombine.low %v1841_v26, %v1843_v27  ;;  %v1872_v27 = vld [vmem:[#allocation5 + $0xad0] sm:$0xff] }
 0x198   :  { %2962 = vmatpush1.bf16.msra.mxu0 %v4175_v30  ;;  %3126 = vmatpush1.bf16.msra.mxu1 %v4177_v31  ;;  %v1844_v30 = vld [vmem:[#allocation5 + $0x910] sm:$0xff] }
 0x199   :  { %2963 = vmatprep.subr.bf16.mxu0 %v4180_v33  ;;  %3127 = vmatprep.subr.bf16.mxu1 %v4182_v35  ;;  %v1846_v31 = vld [vmem:[#allocation5 + $0x930] sm:$0xff]  ;;  %v1845_v33 = vld [vmem:[#allocation5 + $0x918] sm:$0xff] }
 0x19a   :  { %v1847_v35 = vld [vmem:[#allocation5 + $0x938] sm:$0xff]  ;;  %v4212_v38 = vcombine.high %v1844_v30, %v1846_v31 }
 0x19b   :  { %v4213_v45 = vcombine.low %v1845_v33, %v1847_v35 }
 0x19c   :  { %2964 = vmatpush1.bf16.msra.mxu0 %v4179_v40  ;;  %3128 = vmatpush1.bf16.msra.mxu1 %v4181_v41  ;;  %v1850_v40 = vld [vmem:[#allocation5 + $0x970] sm:$0xff]  ;;  %v1849_v41 = vld [vmem:[#allocation5 + $0x958] sm:$0xff] }
 0x19d   :  { %2965 = vmatprep.subr.bf16.mxu0 %v4184_v42  ;;  %3129 = vmatprep.subr.bf16.mxu1 %v4186_v44  ;;  %v1851_v42 = vld [vmem:[#allocation5 + $0x978] sm:$0xff]  ;;  %v4211_v44 = vcombine.low %v1844_v30, %v1846_v31  ;;  %v4216_v46 = vcombine.high %v1848_v39, %v1850_v40 }
 0x19e   :  { %v4218_v48 = vcombine.high %v1849_v41, %v1851_v42  ;;  %v4217_v54 = vcombine.low %v1849_v41, %v1851_v42  ;;  %v1880_v42 = vld [vmem:[#allocation5 + $0xb50] sm:$0xff] }
 0x1a0   :  { %2966 = vmatpush1.bf16.msra.mxu0 %v4183_v50  ;;  %3130 = vmatpush1.bf16.msra.mxu1 %v4185_v51  ;;  %v1854_v50 = vld [vmem:[#allocation5 + $0x9b0] sm:$0xff]  ;;  %v1853_v51 = vld [vmem:[#allocation5 + $0x998] sm:$0xff] }
 0x1a1   :  { %2967 = vmatprep.subr.bf16.mxu0 %v4188_v52  ;;  %3131 = vmatprep.subr.bf16.mxu1 %v4190_v53  ;;  %v1855_v52 = vld [vmem:[#allocation5 + $0x9b8] sm:$0xff]  ;;  %v4215_v53 = vcombine.low %v1848_v39, %v1850_v40  ;;  %v4220_v55 = vcombine.high %v1852_v49, %v1854_v50 }
 0x1a2   :  { %v4222_v56 = vcombine.high %v1853_v51, %v1855_v52  ;;  %v4221_v63 = vcombine.low %v1853_v51, %v1855_v52  ;;  %v1884_v52 = vld [vmem:[#allocation5 + $0xb90] sm:$0xff] }
 0x1a4   :  { %2968 = vmatpush1.bf16.msra.mxu0 %v4187_v59  ;;  %3132 = vmatpush1.bf16.msra.mxu1 %v4189_v60  ;;  %v1858_v59 = vld [vmem:[#allocation5 + $0x9f0] sm:$0xff]  ;;  %v1857_v60 = vld [vmem:[#allocation5 + $0x9d8] sm:$0xff] }
 0x1a5   :  { %2969 = vmatprep.subr.bf16.mxu0 %v4192_v61  ;;  %3133 = vmatprep.subr.bf16.mxu1 %v4194_v62  ;;  %v1859_v61 = vld [vmem:[#allocation5 + $0x9f8] sm:$0xff]  ;;  %v4219_v62 = vcombine.low %v1852_v49, %v1854_v50  ;;  %v4224_v0 = vcombine.high %v1856_v58, %v1858_v59 }
 0x1a6   :  { %v4226_v1 = vcombine.high %v1857_v60, %v1859_v61  ;;  %v4225_v7 = vcombine.low %v1857_v60, %v1859_v61  ;;  %v1888_v61 = vld [vmem:[#allocation5 + $0xbd0] sm:$0xff] }
 0x1a8   :  { %2970 = vmatpush1.bf16.msra.mxu0 %v4191_v3  ;;  %3134 = vmatpush1.bf16.msra.mxu1 %v4193_v4  ;;  %v1862_v3 = vld [vmem:[#allocation5 + $0xa30] sm:$0xff]  ;;  %v1861_v4 = vld [vmem:[#allocation5 + $0xa18] sm:$0xff] }
 0x1a9   :  { %2980 = vmatprep.subr.bf16.mxu0 %v4196_v5  ;;  %3144 = vmatprep.subr.bf16.mxu1 %v4198_v6  ;;  %v1863_v5 = vld [vmem:[#allocation5 + $0xa38] sm:$0xff]  ;;  %v4223_v6 = vcombine.low %v1856_v58, %v1858_v59  ;;  %v4228_v8 = vcombine.high %v1860_v2, %v1862_v3 }
 0x1aa   :  { %v4230_v9 = vcombine.high %v1861_v4, %v1863_v5  ;;  %v4229_v15 = vcombine.low %v1861_v4, %v1863_v5  ;;  %v1892_v5 = vld [vmem:[#allocation5 + $0xc10] sm:$0xff] }
 0x1ab   :  { %2972 = vmatmul.mubr.bf16.vlgmr.msra.gmra.mrb[4].mxu0 %v4802_v25  ;;  %3136 = vmatmul.mubr.bf16.vlgmr.msra.gmra.mrb[4].mxu1 %v4802_v25  ;;  %v4205_v25 = vcombine.low %v1837_v17, %v1839_v12  ;;  %v1868_v12 = vld [vmem:[#allocation5 + $0xa90] sm:$0xff] }
 0x1ac   :  { %2981 = vmatpush1.bf16.msra.mxu0 %v4195_v11  ;;  %3145 = vmatpush1.bf16.msra.mxu1 %v4197_v13  ;;  %v1866_v11 = vld [vmem:[#allocation5 + $0xa70] sm:$0xff]  ;;  %v1865_v13 = vld [vmem:[#allocation5 + $0xa58] sm:$0xff] }
 0x1ad   :  { %2982 = vmatprep.subr.bf16.mxu0 %v4200_v14  ;;  %3146 = vmatprep.subr.bf16.mxu1 %v4202_v57  ;;  %v1867_v14 = vld [vmem:[#allocation5 + $0xa78] sm:$0xff]  ;;  %v4227_v57 = vcombine.low %v1860_v2, %v1862_v3  ;;  %v4232_v16 = vcombine.high %v1864_v10, %v1866_v11 }
 0x1ae   :  { %3012 = vmatprep.mubr.bf16.mxu0 %v4804_v32  ;;  %3176 = vmatprep.mubr.bf16.mxu1 %v4804_v32  ;;  %v4214_v32 = vcombine.high %v1845_v33, %v1847_v35  ;;  %v4234_v17 = vcombine.high %v1865_v13, %v1867_v14  ;;  %v4233_v23 = vcombine.low %v1865_v13, %v1867_v14  ;;  %v1876_v35 = vld [vmem:[#allocation5 + $0xb10] sm:$0xff] }
 0x1b0   :  { %2983 = vmatpush1.bf16.msra.mxu0 %v4199_v18  ;;  %3147 = vmatpush1.bf16.msra.mxu1 %v4201_v19  ;;  %v1870_v18 = vld [vmem:[#allocation5 + $0xab0] sm:$0xff]  ;;  %v1869_v19 = vld [vmem:[#allocation5 + $0xa98] sm:$0xff] }
 0x1b1   :  { %2984 = vmatprep.subr.bf16.mxu0 %v4204_v20  ;;  %3148 = vmatprep.subr.bf16.mxu1 %v4206_v21  ;;  %v1871_v20 = vld [vmem:[#allocation5 + $0xab8] sm:$0xff]  ;;  %v4231_v21 = vcombine.low %v1864_v10, %v1866_v11  ;;  %v4236_v24 = vcombine.high %v1868_v12, %v1870_v18 }
 0x1b2   :  { %v4238_v26 = vcombine.high %v1869_v19, %v1871_v20  ;;  %v4237_v30 = vcombine.low %v1869_v19, %v1871_v20  ;;  %v4490_v19 = vld [vmem:[#allocation8 + $0x1c8] sm:$0xff]  }
 0x1b3   :  { %v4492_v20 = vld [vmem:[#allocation8 + $0x188] sm:$0xff]  }
 0x1b4   :  { %2985 = vmatpush1.bf16.msra.mxu0 %v4203_v28  ;;  %3149 = vmatpush1.bf16.msra.mxu1 %v4205_v25  ;;  %v1874_v28 = vld [vmem:[#allocation5 + $0xaf0] sm:$0xff]  ;;  %v1873_v25 = vld [vmem:[#allocation5 + $0xad8] sm:$0xff] }
 0x1b5   :  { %2986 = vmatprep.subr.bf16.mxu0 %v4208_v22  ;;  %3150 = vmatprep.subr.bf16.mxu1 %v4210_v29  ;;  %v1875_v22 = vld [vmem:[#allocation5 + $0xaf8] sm:$0xff]  ;;  %v4235_v29 = vcombine.low %v1868_v12, %v1870_v18  ;;  %v4240_v31 = vcombine.high %v1872_v27, %v1874_v28  ;;  %v4488_v12 = vld [vmem:[#allocation8 + $0x180] sm:$0xff]   ;;  %v4489_v18 = vld [vmem:[#allocation8 + $0x148] sm:$0xff]  }
 0x1b6   :  { %v4242_v33 = vcombine.high %v1873_v25, %v1875_v22  ;;  %v4241_v39 = vcombine.low %v1873_v25, %v1875_v22 }
 0x1b8   :  { %2987 = vmatpush1.bf16.msra.mxu0 %v4207_v36  ;;  %3151 = vmatpush1.bf16.msra.mxu1 %v4209_v37  ;;  %v1878_v36 = vld [vmem:[#allocation5 + $0xb30] sm:$0xff]  ;;  %v1877_v37 = vld [vmem:[#allocation5 + $0xb18] sm:$0xff] }
 0x1b9   :  { %2988 = vmatprep.subr.bf16.mxu0 %v4212_v38  ;;  %3152 = vmatprep.subr.bf16.mxu1 %v4214_v32  ;;  %v1879_v38 = vld [vmem:[#allocation5 + $0xb38] sm:$0xff]  ;;  %v4239_v32 = vcombine.low %v1872_v27, %v1874_v28  ;;  %v4244_v40 = vcombine.high %v1876_v35, %v1878_v36  ;;  %v4498_v28 = vld [vmem:[#allocation8 + $0x1d8] sm:$0xff]  }
 0x1ba   :  { %v4246_v41 = vcombine.high %v1877_v37, %v1879_v38  ;;  %v4245_v49 = vcombine.low %v1877_v37, %v1879_v38  ;;  %v4502_v38 = vld [vmem:[#allocation8 + $0x1e0] sm:$0xff]  }
 0x1bc   :  { %2989 = vmatpush1.bf16.msra.mxu0 %v4211_v44  ;;  %3153 = vmatpush1.bf16.msra.mxu1 %v4213_v45  ;;  %v1882_v44 = vld [vmem:[#allocation5 + $0xb70] sm:$0xff]  ;;  %v1881_v45 = vld [vmem:[#allocation5 + $0xb58] sm:$0xff] }
 0x1bd   :  { %2990 = vmatprep.subr.bf16.mxu0 %v4216_v46  ;;  %3154 = vmatprep.subr.bf16.mxu1 %v4218_v48  ;;  %v1883_v46 = vld [vmem:[#allocation5 + $0xb78] sm:$0xff]  ;;  %v4243_v48 = vcombine.low %v1876_v35, %v1878_v36  ;;  %v4248_v50 = vcombine.high %v1880_v42, %v1882_v44  ;;  %v4500_v35 = vld [vmem:[#allocation8 + $0x198] sm:$0xff]   ;;  %v4501_v36 = vld [vmem:[#allocation8 + $0x160] sm:$0xff]  }
 0x1be   :  { %v4250_v51 = vcombine.high %v1881_v45, %v1883_v46  ;;  %v4249_v58 = vcombine.low %v1881_v45, %v1883_v46  ;;  %v4509_v45 = vld [vmem:[#allocation8 + $0x170] sm:$0xff]  }
 0x1bf   :  { %v4510_v46 = vld [vmem:[#allocation8 + $0x1f0] sm:$0xff]  }
 0x1c0   :  { %2991 = vmatpush1.bf16.msra.mxu0 %v4215_v53  ;;  %3155 = vmatpush1.bf16.msra.mxu1 %v4217_v54  ;;  %v1886_v53 = vld [vmem:[#allocation5 + $0xbb0] sm:$0xff]  ;;  %v1885_v54 = vld [vmem:[#allocation5 + $0xb98] sm:$0xff] }
 0x1c1   :  { %2992 = vmatprep.subr.bf16.mxu0 %v4220_v55  ;;  %3156 = vmatprep.subr.bf16.mxu1 %v4222_v56  ;;  %v1887_v55 = vld [vmem:[#allocation5 + $0xbb8] sm:$0xff]  ;;  %v4247_v56 = vcombine.low %v1880_v42, %v1882_v44  ;;  %v4252_v59 = vcombine.high %v1884_v52, %v1886_v53  ;;  %v4507_v42 = vld [vmem:[#allocation8 + $0x128] sm:$0xff]  }
 0x1c2   :  { %v4254_v60 = vcombine.high %v1885_v54, %v1887_v55  ;;  %v4253_v2 = vcombine.low %v1885_v54, %v1887_v55  ;;  %v4508_v44 = vld [vmem:[#allocation8 + $0x1a8] sm:$0xff]   ;;  %v4517_v54 = vld [vmem:[#allocation8 + $0x40] sm:$0xff]  }
 0x1c3   :  { %v4518_v55 = vld [vmem:[#allocation8 + $0xc0] sm:$0xff]  }
 0x1c4   :  { %2993 = vmatpush1.bf16.msra.mxu0 %v4219_v62  ;;  %3157 = vmatpush1.bf16.msra.mxu1 %v4221_v63  ;;  %v1890_v62 = vld [vmem:[#allocation5 + $0xbf0] sm:$0xff]  ;;  %v1889_v63 = vld [vmem:[#allocation5 + $0xbd8] sm:$0xff] }
 0x1c5   :  { %2994 = vmatprep.subr.bf16.mxu0 %v4224_v0  ;;  %3158 = vmatprep.subr.bf16.mxu1 %v4226_v1  ;;  %v1891_v0 = vld [vmem:[#allocation5 + $0xbf8] sm:$0xff]  ;;  %v4251_v1 = vcombine.low %v1884_v52, %v1886_v53  ;;  %v4256_v3 = vcombine.high %v1888_v61, %v1890_v62  ;;  %v4515_v52 = vld [vmem:[#allocation8 + $0x138] sm:$0xff]  }
 0x1c6   :  { %v4258_v4 = vcombine.high %v1889_v63, %v1891_v0  ;;  %v4257_v10 = vcombine.low %v1889_v63, %v1891_v0  ;;  %v4516_v53 = vld [vmem:[#allocation8 + $0x1b8] sm:$0xff]  }
 0x1c8   :  { %2995 = vmatpush1.bf16.msra.mxu0 %v4223_v6  ;;  %3159 = vmatpush1.bf16.msra.mxu1 %v4225_v7  ;;  %v1894_v6 = vld [vmem:[#allocation5 + $0xc30] sm:$0xff]  ;;  %v1893_v7 = vld [vmem:[#allocation5 + $0xc18] sm:$0xff] }
 0x1c9   :  { %2996 = vmatprep.subr.bf16.mxu0 %v4228_v8  ;;  %3160 = vmatprep.subr.bf16.mxu1 %v4230_v9  ;;  %v1895_v8 = vld [vmem:[#allocation5 + $0xc38] sm:$0xff]  ;;  %v4255_v9 = vcombine.low %v1888_v61, %v1890_v62  ;;  %v4260_v11 = vcombine.high %v1892_v5, %v1894_v6  ;;  %v4259_v14 = vcombine.low %v1892_v5, %v1894_v6  ;;  %v1896_v62 = vld [vmem:[#allocation7 + $0x4] sm:$0xf] }
 0x1ca   :  { %v4262_v13 = vcombine.high %v1893_v7, %v1895_v8 }
 0x1cc   :  { %2997 = vmatpush1.bf16.msra.mxu0 %v4227_v57  ;;  %3161 = vmatpush1.bf16.msra.mxu1 %v4229_v15  ;;  %v4261_v57 = vcombine.low %v1893_v7, %v1895_v8  ;;  %v4485_v15 = vld [vmem:[#allocation8 + $0x140] sm:$0xff]  }
 0x1cd   :  { %2998 = vmatprep.subr.bf16.mxu0 %v4232_v16  ;;  %3162 = vmatprep.subr.bf16.mxu1 %v4234_v17  ;;  %v4486_v16 = vld [vmem:[#allocation8 + $0x1c0] sm:$0xff]  }
 0x1ce   :  { %v4487_v17 = vld [vmem:[#allocation8 + $0x100] sm:$0xff]  }
 0x1d0   :  { %2999 = vmatpush1.bf16.msra.mxu0 %v4231_v21  ;;  %3163 = vmatpush1.bf16.msra.mxu1 %v4233_v23  ;;  %v4493_v21 = vld [vmem:[#allocation8 + $0x150] sm:$0xff]  }
 0x1d1   :  { %3000 = vmatprep.subr.bf16.mxu0 %v4236_v24  ;;  %3164 = vmatprep.subr.bf16.mxu1 %v4238_v26  ;;  %v4495_v23 = vld [vmem:[#allocation8 + $0x110] sm:$0xff]   ;;  %v4497_v26 = vld [vmem:[#allocation8 + $0x158] sm:$0xff]  }
 0x1d2   :  { %v4496_v24 = vld [vmem:[#allocation8 + $0x190] sm:$0xff]  }
 0x1d4   :  { %3001 = vmatpush1.bf16.msra.mxu0 %v4235_v29  ;;  %3165 = vmatpush1.bf16.msra.mxu1 %v4237_v30  ;;  %v4499_v30 = vld [vmem:[#allocation8 + $0x118] sm:$0xff]  }
 0x1d5   :  { %3002 = vmatprep.subr.bf16.mxu0 %v4240_v31  ;;  %3166 = vmatprep.subr.bf16.mxu1 %v4242_v33 }
 0x1d8   :  { %3003 = vmatpush1.bf16.msra.mxu0 %v4239_v32  ;;  %3167 = vmatpush1.bf16.msra.mxu1 %v4241_v39  ;;  %v4503_v32 = vld [vmem:[#allocation8 + $0x120] sm:$0xff]  }
 0x1d9   :  { %3004 = vmatprep.subr.bf16.mxu0 %v4244_v40  ;;  %3168 = vmatprep.subr.bf16.mxu1 %v4246_v41  ;;  %v4504_v39 = vld [vmem:[#allocation8 + $0x1a0] sm:$0xff]   ;;  %v4505_v40 = vld [vmem:[#allocation8 + $0x168] sm:$0xff]  }
 0x1da   :  { %v4506_v41 = vld [vmem:[#allocation8 + $0x1e8] sm:$0xff]  }
 0x1dc   :  { %3005 = vmatpush1.bf16.msra.mxu0 %v4243_v48  ;;  %3169 = vmatpush1.bf16.msra.mxu1 %v4245_v49  ;;  %v4511_v48 = vld [vmem:[#allocation8 + $0x130] sm:$0xff]  }
 0x1dd   :  { %3006 = vmatprep.subr.bf16.mxu0 %v4248_v50  ;;  %3170 = vmatprep.subr.bf16.mxu1 %v4250_v51  ;;  %v4512_v49 = vld [vmem:[#allocation8 + $0x1b0] sm:$0xff]   ;;  %v4513_v50 = vld [vmem:[#allocation8 + $0x178] sm:$0xff]  }
 0x1de   :  { %v4514_v51 = vld [vmem:[#allocation8 + $0x1f8] sm:$0xff]  }
 0x1e0   :  { %3007 = vmatpush1.bf16.msra.mxu0 %v4247_v56  ;;  %3171 = vmatpush1.bf16.msra.mxu1 %v4249_v58  ;;  %v296_v56 = vlaneseq }
 0x1e1   :  { %3008 = vmatprep.subr.bf16.mxu0 %v4252_v59  ;;  %3172 = vmatprep.subr.bf16.mxu1 %v4254_v60  ;;  %v4851_v60 = vld [vmem:[#allocation7] sm:$0xf] }
 0x1e2   :  { %v4848_v58 = vshrl.u32 %v296_v56, 7  ;;  %v4540_v56 = vld [vmem:[#allocation8 + $0xa8] sm:$0xff]  }
 0x1e4   :  { %3009 = vmatpush1.bf16.msra.mxu0 %v4251_v1  ;;  %3173 = vmatpush1.bf16.msra.mxu1 %v4253_v2  ;;  %v302_v59 = vsub.s32 1, %v4848_v58  ;;  %v310_v61 = vsub.s32 3, %v4848_v58  ;;  %v298_v63 = vsub.s32 0, %v4848_v58  ;;  %v306_v0 = vsub.s32 2, %v4848_v58  ;;  %v4548_v58 = vld [vmem:[#allocation8 + $0xb8] sm:$0xff]  }
 0x1e5   :  { %3010 = vmatprep.subr.bf16.mxu0 %v4256_v3  ;;  %3174 = vmatprep.subr.bf16.mxu1 %v4258_v4 }
 0x1e6   :  { %v303_v1 = vrot.slane %v4851_v60, %v302_v59  ;;  %v1901_v2 = vrot.slane %v1896_v62, %v298_v63  ;;  %v311_v3 = vrot.slane %v4851_v60, %v310_v61  ;;  %v1909_v4 = vrot.slane %v1896_v62, %v306_v0 }
 0x1e7   :  { %v1905_v5 = vrot.slane %v1896_v62, %v302_v59  ;;  %v1913_v6 = vrot.slane %v1896_v62, %v310_v61  ;;  %v4541_v59 = vld [vmem:[#allocation8 + $0x70] sm:$0xff]   ;;  %v307_v61 = vrot.slane %v4851_v60, %v306_v0 }
 0x1e8   :  { %3011 = vmatpush1.bf16.msra.mxu0 %v4255_v9  ;;  %3175 = vmatpush1.bf16.msra.mxu1 %v4257_v10  ;;  %v4542_v62 = vld [vmem:[#allocation8 + $0xf0] sm:$0xff]  }
 0x1e9   :  { %3021 = vmatprep.subr.bf16.mxu0 %v4260_v11  ;;  %3185 = vmatprep.subr.bf16.mxu1 %v4262_v13 }
 0x1eb   :  { %3013 = vmatmul.mubr.bf16.vlgmr.msra.gmra.mrb[4].mxu0 %v4810_v34  ;;  %3177 = vmatmul.mubr.bf16.vlgmr.msra.gmra.mrb[4].mxu1 %v4810_v34  ;;  %v4491_v34 = vld [vmem:[#allocation8 + $0x108] sm:$0xff]  }
 0x1ec   :  { %3022 = vmatpush1.bf16.msra.mxu0 %v4259_v14  ;;  %3186 = vmatpush1.bf16.msra.mxu1 %v4261_v57 }
 0x1ed   :  { %3053 = vmatprep.mubr.bf16.mxu0 %v4698_v43  ;;  %3217 = vmatprep.mubr.bf16.mxu1 %v4698_v43  ;;  %v4494_v43 = vld [vmem:[#allocation8 + $0x1d0] sm:$0xff]  }
 0x1ee   :  { %4330 = vmatprep.subr.bf16.mxu0 %v4485_v15  ;;  %4352 = vmatprep.subr.bf16.mxu1 %v4486_v16 }
 0x1f7   :  { %4263 = vmatmul.mubr.msk.bf16.vlgmr.msra.gmra.mrb[4].mxu0 %vm1296_vm0, %v4816_v47  ;;  %4264 = vmatmul.mubr.msk.bf16.vlgmr.msra.gmra.mrb[4].mxu1 %vm1296_vm0, %v4816_v47 }
 0x1f8   :  { %4331 = vmatpush3.bf16.msra.mxu0 %v4487_v17  ;;  %4353 = vmatpush3.bf16.msra.mxu1 %v4488_v12 }
 0x1f9   :  { %4332 = vmatprep.subr.bf16.mxu0 %v4489_v18  ;;  %4354 = vmatprep.subr.bf16.mxu1 %v4490_v19 }
 0x1fc   :  { %4333 = vmatpush3.bf16.msra.mxu0 %v4491_v34  ;;  %4355 = vmatpush3.bf16.msra.mxu1 %v4492_v20 }
 0x1fd   :  { %4334 = vmatprep.subr.bf16.mxu0 %v4493_v21  ;;  %4356 = vmatprep.subr.bf16.mxu1 %v4494_v43 }
 0x1fe   :  { %v4840_v27 = vpop.f32.mrb[0].mxu0  ;;  %v4842_v25 = vpop.f32.mrb[0].mxu1 }
 0x1ff   :  { %v4844_v47 = vpop.f32.mrb[1].mxu0  ;;  %v4846_v22 = vpop.f32.mrb[1].mxu1 }
 0x200   :  { %v1461_v29 = vpop.f32.mrb[2].mxu0  ;;  %4335 = vmatpush3.bf16.msra.mxu0 %v4495_v23  ;;  %v1625_v31 = vpop.f32.mrb[2].mxu1  ;;  %4357 = vmatpush3.bf16.msra.mxu1 %v4496_v24  ;;  %v4419_v8 = vadd.f32 %v4844_v47, %v303_v1  ;;  %v4421_v13 = vadd.f32 %v4846_v22, %v311_v3  ;;  %v4543_v1 = vld [vmem:[#allocation8 + $0x30] sm:$0xff]  }
 0x201   :  { %v1462_v33 = vpop.f32.mrb[3].mxu0  ;;  %4336 = vmatprep.subr.bf16.mxu0 %v4497_v26  ;;  %v1626_v37 = vpop.f32.mrb[3].mxu1  ;;  %4358 = vmatprep.subr.bf16.mxu1 %v4498_v28  ;;  %v4519_v28 = vld [vmem:[#allocation8] sm:$0xff]   ;;  %v4521_v31 = vld [vmem:[#allocation8 + $0x48] sm:$0xff]   ;;  %v4544_v3 = vld [vmem:[#allocation8 + $0xb0] sm:$0xff]  }
 0x202   :  { %v1629_v43 = vmax.f32 %v4419_v8, 0.0  ;;  %v1631_v24 = vmax.f32 %v4421_v13, 0.0  ;;  %v4523_v37 = vld [vmem:[#allocation8 + $0x8] sm:$0xff]  }
 0x204   :  { %4337 = vmatpush3.bf16.msra.mxu0 %v4499_v30  ;;  %4359 = vmatpush3.bf16.msra.mxu1 %v4500_v35  ;;  %v4520_v30 = vld [vmem:[#allocation8 + $0x80] sm:$0xff]   ;;  %v1633_v33 = vpack.c.bf16 %v1629_v43, %v1629_v43  ;;  %v4522_v35 = vld [vmem:[#allocation8 + $0xc8] sm:$0xff]  }
 0x205   :  { %4338 = vmatprep.subr.bf16.mxu0 %v4501_v36  ;;  %4360 = vmatprep.subr.bf16.mxu1 %v4502_v38  ;;  %v1635_v36 = vpack.c.bf16 %v1631_v24, %v1631_v24  ;;  %v4524_v38 = vld [vmem:[#allocation8 + $0x88] sm:$0xff]  }
 0x208   :  { %4339 = vmatpush3.bf16.msra.mxu0 %v4503_v32  ;;  %4361 = vmatpush3.bf16.msra.mxu1 %v4504_v39  ;;  %v4525_v32 = vld [vmem:[#allocation8 + $0x50] sm:$0xff]  }
 0x209   :  { %4340 = vmatprep.subr.bf16.mxu0 %v4505_v40  ;;  %4362 = vmatprep.subr.bf16.mxu1 %v4506_v41  ;;  %v4526_v39 = vld [vmem:[#allocation8 + $0xd0] sm:$0xff]  }
 0x20a   :  { %v4527_v40 = vld [vmem:[#allocation8 + $0x10] sm:$0xff]  }
 0x20b   :  { %v4528_v41 = vld [vmem:[#allocation8 + $0x90] sm:$0xff]  }
 0x20c   :  { %4341 = vmatpush3.bf16.msra.mxu0 %v4507_v42  ;;  %4363 = vmatpush3.bf16.msra.mxu1 %v4508_v44  ;;  %v4529_v42 = vld [vmem:[#allocation8 + $0x58] sm:$0xff]  }
 0x20d   :  { %4342 = vmatprep.subr.bf16.mxu0 %v4509_v45  ;;  %4364 = vmatprep.subr.bf16.mxu1 %v4510_v46  ;;  %v4530_v44 = vld [vmem:[#allocation8 + $0xd8] sm:$0xff]  }
 0x20e   :  { %v4531_v45 = vld [vmem:[#allocation8 + $0x18] sm:$0xff]  }
 0x20f   :  { %v4532_v46 = vld [vmem:[#allocation8 + $0x98] sm:$0xff]  }
 0x210   :  { %4343 = vmatpush3.bf16.msra.mxu0 %v4511_v48  ;;  %4365 = vmatpush3.bf16.msra.mxu1 %v4512_v49  ;;  %v4533_v48 = vld [vmem:[#allocation8 + $0x60] sm:$0xff]  }
 0x211   :  { %4344 = vmatprep.subr.bf16.mxu0 %v4513_v50  ;;  %4366 = vmatprep.subr.bf16.mxu1 %v4514_v51  ;;  %v4534_v49 = vld [vmem:[#allocation8 + $0xe0] sm:$0xff]  }
 0x212   :  { %v4535_v50 = vld [vmem:[#allocation8 + $0x20] sm:$0xff]  }
 0x213   :  { %v4536_v51 = vld [vmem:[#allocation8 + $0xa0] sm:$0xff]  }
 0x214   :  { %4345 = vmatpush3.bf16.msra.mxu0 %v4515_v52  ;;  %4367 = vmatpush3.bf16.msra.mxu1 %v4516_v53  ;;  %v4537_v52 = vld [vmem:[#allocation8 + $0x68] sm:$0xff]  }
 0x215   :  { %4374 = vmatprep.subr.bf16.mxu0 %v4517_v54  ;;  %4396 = vmatprep.subr.bf16.mxu1 %v4518_v55  ;;  %v4538_v53 = vld [vmem:[#allocation8 + $0xe8] sm:$0xff]   ;;  %v299_v55 = vrot.slane %v4851_v60, %v298_v63  ;;  %v4420_v63 = vadd.f32 %v4842_v25, %v307_v61 }
 0x216   :  { %v4539_v54 = vld [vmem:[#allocation8 + $0x28] sm:$0xff]  }
 0x217   :  { %v1630_v60 = vmax.f32 %v4420_v63, 0.0 }
 0x2ca   :  { %v3055_v7 = vpop.f32.mrb[4].mxu0  ;;  %v3219_v10 = vpop.f32.mrb[4].mxu1 }
 0x2cb   :  { %v4422_v9 = vadd.f32 %v3055_v7, %v1901_v2  ;;  %v3057_v11 = vpop.f32.mrb[5].mxu0  ;;  %v4424_v14 = vadd.f32 %v3219_v10, %v1909_v4  ;;  %v3221_v15 = vpop.f32.mrb[5].mxu1  ;;  %v4418_v2 = vadd.f32 %v4840_v27, %v299_v55  ;;  %v4545_v4 = vld [vmem:[#allocation8 + $0x78] sm:$0xff]   ;;  %v1634_v27 = vpack.c.bf16 %v1630_v60, %v1630_v60 }
 0x2cc   :  { %v4423_v57 = vadd.f32 %v3057_v11, %v1905_v5  ;;  %v3059_v16 = vpop.f32.mrb[6].mxu0  ;;  %v4425_v12 = vadd.f32 %v3221_v15, %v1913_v6  ;;  %v3223_v18 = vpop.f32.mrb[6].mxu1  ;;  %v4546_v5 = vld [vmem:[#allocation8 + $0xf8] sm:$0xff]  }
 0x2cd   :  { %v3226_v17 = vmax.f32 %v4422_v9, 0.0  ;;  %v3060_v19 = vpop.f32.mrb[7].mxu0  ;;  %v3228_v34 = vmax.f32 %v4424_v14, 0.0  ;;  %v3224_v21 = vpop.f32.mrb[7].mxu1  ;;  %v4547_v6 = vld [vmem:[#allocation8 + $0x38] sm:$0xff]   ;;  %v1628_v7 = vmax.f32 %v4418_v2, 0.0 }
 0x2ce   :  { %v3227_v20 = vmax.f32 %v4423_v57, 0.0  ;;  %v3229_v23 = vmax.f32 %v4425_v12, 0.0 }
 0x2cf   :  { %v3230_v47 = vpack.c.bf16 %v3226_v17, %v3226_v17  ;;  %v3232_v22 = vpack.c.bf16 %v3228_v34, %v3228_v34  ;;  %v1632_v0 = vpack.c.bf16 %v1628_v7, %v1628_v7 }
 0x2d0   :  { %v3231_v26 = vpack.c.bf16 %v3227_v20, %v3227_v20  ;;  %v3233_v29 = vpack.c.bf16 %v3229_v23, %v3229_v23 }
 0x2d2   :  { %3522 = vmatprep.mubr.bf16.mxu0 %v3231_v26  ;;  %3562 = vmatprep.mubr.bf16.mxu1 %v3233_v29 }
 0x2d3   :  { %3523 = vmatmul.mubr.bf16.vlgmr.msra.gmra.mrb[8].mxu0 %v3230_v47  ;;  %3563 = vmatmul.mubr.bf16.vlgmr.msra.gmra.mrb[8].mxu1 %v3232_v22  ;;  %v4329_v47 = vld [vmem:[#allocation10] ss:$0 sm:$0xff] }
 0x2d4   :  { %4375 = vmatpush3.bf16.msra.mxu0 %v4519_v28  ;;  %4397 = vmatpush3.bf16.msra.mxu1 %v4520_v30 }
 0x2d5   :  { %3794 = vmatprep.mubr.bf16.mxu0 %v1633_v33  ;;  %3834 = vmatprep.mubr.bf16.mxu1 %v1635_v36 }
 0x2d6   :  { %4376 = vmatprep.subr.bf16.mxu0 %v4521_v31  ;;  %4398 = vmatprep.subr.bf16.mxu1 %v4522_v35 }
 0x2d8   :  { %4377 = vmatpush3.bf16.msra.mxu0 %v4523_v37  ;;  %4399 = vmatpush3.bf16.msra.mxu1 %v4524_v38 }
 0x2d9   :  { %4378 = vmatprep.subr.bf16.mxu0 %v4525_v32  ;;  %4400 = vmatprep.subr.bf16.mxu1 %v4526_v39 }
 0x2dc   :  { %4379 = vmatpush3.bf16.msra.mxu0 %v4527_v40  ;;  %4401 = vmatpush3.bf16.msra.mxu1 %v4528_v41 }
 0x2dd   :  { %4380 = vmatprep.subr.bf16.mxu0 %v4529_v42  ;;  %4402 = vmatprep.subr.bf16.mxu1 %v4530_v44 }
 0x2e0   :  { %4381 = vmatpush3.bf16.msra.mxu0 %v4531_v45  ;;  %4403 = vmatpush3.bf16.msra.mxu1 %v4532_v46 }
 0x2e1   :  { %4382 = vmatprep.subr.bf16.mxu0 %v4533_v48  ;;  %4404 = vmatprep.subr.bf16.mxu1 %v4534_v49 }
 0x2e4   :  { %4383 = vmatpush3.bf16.msra.mxu0 %v4535_v50  ;;  %4405 = vmatpush3.bf16.msra.mxu1 %v4536_v51 }
 0x2e5   :  { %4384 = vmatprep.subr.bf16.mxu0 %v4537_v52  ;;  %4406 = vmatprep.subr.bf16.mxu1 %v4538_v53 }
 0x2e8   :  { %4385 = vmatpush3.bf16.msra.mxu0 %v4539_v54  ;;  %4407 = vmatpush3.bf16.msra.mxu1 %v4540_v56 }
 0x2e9   :  { %4386 = vmatprep.subr.bf16.mxu0 %v4541_v59  ;;  %4408 = vmatprep.subr.bf16.mxu1 %v4542_v62 }
 0x2ec   :  { %4387 = vmatpush3.bf16.msra.mxu0 %v4543_v1  ;;  %4409 = vmatpush3.bf16.msra.mxu1 %v4544_v3 }
 0x2ed   :  { %4388 = vmatprep.subr.bf16.mxu0 %v4545_v4  ;;  %4410 = vmatprep.subr.bf16.mxu1 %v4546_v5 }
 0x2f0   :  { %4389 = vmatpush3.bf16.msra.mxu0 %v4547_v6  ;;  %4411 = vmatpush3.bf16.msra.mxu1 %v4548_v58 }
 0x2f3   :  { %3795 = vmatmul.mubr.bf16.vlgmr.msra.gmra.mrb[12].mxu0 %v1632_v0  ;;  %3835 = vmatmul.mubr.bf16.vlgmr.msra.gmra.mrb[12].mxu1 %v1634_v27 }
 0x3a6   :  { %v4346_v8 = vpop.f32.mrb[8].mxu0  ;;  %v4368_v9 = vpop.f32.mrb[8].mxu1 }
 0x3a7   :  { %v4347_v10 = vpop.f32.mrb[9].mxu0  ;;  %v4369_v11 = vpop.f32.mrb[9].mxu1 }
 0x3a8   :  { %v4348_v25 = vadd.f32 %v4347_v10, %v4346_v8  ;;  %v4349_v13 = vpop.f32.mrb[10].mxu0  ;;  %v4370_v14 = vadd.f32 %v4369_v11, %v4368_v9  ;;  %v4371_v57 = vpop.f32.mrb[10].mxu1 }
 0x3a9   :  { %v4350_v15 = vpop.f32.mrb[11].mxu0  ;;  %v4372_v16 = vpop.f32.mrb[11].mxu1 }
 0x3aa   :  { %v3565_v17 = vadd.f32 %v4370_v14, %v4348_v25 }
 0x3c6   :  { %v4390_v12 = vpop.f32.mrb[12].mxu0  ;;  %v4412_v18 = vpop.f32.mrb[12].mxu1 }
 0x3c7   :  { %v4391_v19 = vpop.f32.mrb[13].mxu0  ;;  %v4413_v20 = vpop.f32.mrb[13].mxu1 }
 0x3c8   :  { %v4392_v34 = vadd.f32 %v4391_v19, %v4390_v12  ;;  %v4393_v21 = vpop.f32.mrb[14].mxu0  ;;  %v4414_v43 = vadd.f32 %v4413_v20, %v4412_v18  ;;  %v4415_v23 = vpop.f32.mrb[14].mxu1 }
 0x3c9   :  { %v4394_v24 = vpop.f32.mrb[15].mxu0  ;;  %v4416_v28 = vpop.f32.mrb[15].mxu1 }
 0x3ca   :  { %v3797_v26 = vadd.f32 %v4392_v34, %v3565_v17 }
 0x3cc   :  { %v3837_v29 = vadd.f32 %v4414_v43, %v3797_v26 }
 0x3ce   :  { %v3849_v30 = vadd.f32 %v4329_v47, %v3837_v29 }
 0x3d0   :  { %v3850_v22 = vpack.c.bf16 %v3849_v30, %v3849_v30 }
 0x3d2   :  { %3851 = vst [vmem:[#allocation11] sm:$0xf] %v3850_v22 }
 0x3d3   :  { %4670 = shalt.err (!%p4667_p2)
}
 0x3d4   :  { %s4671_s6 = scalar_lea.hbm %s4889_s5, 64 }
 0x3d5   :  { %p4672_p3 = scmp.ne.s32.totalorder %s4889_s5, %s4671_s6  ;;  %p4675_p4 = scmp.lt.u32.totalorder %s4671_s6, %s4889_s5 }
 0x3d7   :  { %p4677_p5 = pnand %p4675_p4, %p4672_p3 }
 0x3d9   :  { %4680 = shalt.err (!%p4677_p5)
}
 0x3da   :  { %3861 = dma.vmem_to_hbm [thread:$0]  %s3859_s28, 64, %s4889_s5, [#allocation4]  }
 0x3db   :  { %4687 = dma.done.wait [#allocation4], 64  }
 0x3dc   :  { %4688 = vsyncadd [#allocation4], 4294967232 }
 0x3dd   :  { %3865 = vsyncpa [#allocation3], 1 }
 0x3de   :  { %3866 = vsyncpa [#allocation6], 1 }
 0x3df   :  { %3867 = vsyncpa [#allocation9], 1 }
 0x3e0   :  { %3868 = vsyncpa [#allocation4], 1 }

</bundles_post_ra>
